<compile_context>
chip_gen: v7x
topology: tpu7x:2x2x1
jax: 0.10.0
libtpu: 0.0.40
codegen_flags: <defaults>
</compile_context>

<pallas_src>
import functools

import jax
import jax.numpy as jnp
from jax.experimental import pallas as pl
from jax.experimental.pallas import tpu as pltpu


def _round_up(x: int, m: int) -> int:
    return ((x + m - 1) // m) * m


def _ceil_div(a: int, b: int) -> int:
    return -(-a // b)


# ----------------------------------------------------------------------------
# Pallas kernel (one grid step = BT batch rows, everything lane-dense)
#   slab_ref : (BT, MN + K*N + K*M)   [ x_flat | vh (k-major) | u*s (k-major) ]
#   ew_ref   : (K*M, K*MN)  block-diag placement weight, embeds wu*ws
#   tw_ref   : (K*N, K*MN)  block-diag placement weight, embeds wv
#   tk_ref   : (MN, MN)     folded FFT operator kron(T.T, I_N)
#   o_ref    : (BT, MN)
# ----------------------------------------------------------------------------
def svd_block_kernel(slab_ref, ew_ref, tw_ref, tk_ref, o_ref, *, K, MN, KM, KN):
    slab = slab_ref[...]                               # one full-lane load
    x_part = slab[:, :MN]                              # (BT, 128)  lane group 0
    vh_part = slab[:, MN:MN + KN]                      # (BT, 128)  lane group 1
    u_part = slab[:, MN + KN:MN + KN + KM]             # (BT, 64)   lane group 2

    # Consolidated block-diagonal SVD placement matmuls (f32 accumulation).
    #   a[b, k*MN+p] = u[b, p//N, k] * s[b,k] * wu[p//N, k] * ws[k]
    #   v[b, k*MN+p] = vh[b, k, p%N] * wv[k, p%N]
    a = jnp.dot(u_part, ew_ref[...], preferred_element_type=jnp.float32)   # (BT, K*MN)
    v = jnp.dot(vh_part, tw_ref[...], preferred_element_type=jnp.float32)  # (BT, K*MN)

    # Rank-K combine: K multiply-adds on 128-aligned lane chunks (VPU only,
    # no cross-lane relayout), then sin on the EUP in f32.
    acc = a[:, :MN] * v[:, :MN]
    for k in range(1, K):
        lo = k * MN
        acc = acc + a[:, lo:lo + MN] * v[:, lo:lo + MN]
    out_svd = jnp.sin(acc)                                                 # (BT, MN)

    # FFT branch last so its result is not live across the combine loop.
    fft_out = jnp.dot(x_part, tk_ref[...], preferred_element_type=jnp.float32)

    o_ref[...] = (out_svd + fft_out).astype(o_ref.dtype)


def svd_block_pallas(slab, ew_bd, tw_bd, t_kron, *, block_b, K, M, N, out_dtype):
    Bp, slab_w = slab.shape
    MN, KM, KN = M * N, K * M, K * N
    KMN = K * MN
    grid = (Bp // block_b,)

    kernel = functools.partial(svd_block_kernel, K=K, MN=MN, KM=KM, KN=KN)

    # Advisory cost estimate so XLA schedules this sensibly next to the SVDs.
    flops = int(Bp * (2 * KM * KMN + 2 * KN * KMN + 2 * MN * MN + 3 * K * MN + MN))
    bytes_accessed = int(
        sum(int(a.size) * a.dtype.itemsize for a in (slab, ew_bd, tw_bd, t_kron))
        + Bp * MN * jnp.dtype(out_dtype).itemsize)
    cost = pl.CostEstimate(flops=flops, transcendentals=int(Bp * MN),
                           bytes_accessed=bytes_accessed)

    # VMEM headroom note (review item): at block_b=512 / bf16 inputs / f32 out
    # the footprint (double-buffered slab + out, resident weights, f32 (BT,1024)
    # intermediates) is ~7 MiB; at block_b=1024 ~13 MiB -- comfortably under
    # the 32 MiB scoped limit below and under v7x's 64 MiB physical VMEM
    # (v5e/v6e have 128 MiB).  Re-check before raising block_b further.
    return pl.pallas_call(
        kernel,
        out_shape=jax.ShapeDtypeStruct((Bp, MN), out_dtype),
        grid=grid,
        in_specs=[
            pl.BlockSpec((block_b, slab_w), lambda b: (b, 0)),   # fused input slab
            pl.BlockSpec((KM, KMN), lambda b: (0, 0)),           # EW_bd  (weights)
            pl.BlockSpec((KN, KMN), lambda b: (0, 0)),           # TW_bd  (weights)
            pl.BlockSpec((MN, MN), lambda b: (0, 0)),            # t_kron (weights)
        ],
        out_specs=pl.BlockSpec((block_b, MN), lambda b: (b, 0)),
        compiler_params=pltpu.CompilerParams(
            dimension_semantics=("parallel",),   # batch chunks -> v7x 2 TCs
            vmem_limit_bytes=32 * 1024 * 1024,
        ),
        cost_estimate=cost,
    )(slab, ew_bd, tw_bd, t_kron)


# ----------------------------------------------------------------------------
# Parameter setup / one-time weight transforms / glue (plain JAX)
# ----------------------------------------------------------------------------
def make_params(key, modes1, modes2, F_channels):
    """Deterministic init mirroring the PyTorch __init__ (torch.rand -> U[0,1))."""
    k1, k2, k3 = jax.random.split(key, 3)
    scale = 1.0 / (modes1 * modes2)
    w_fft_re = jax.random.uniform(k1, (modes1, modes2), dtype=jnp.float32)
    w_fft_im = jax.random.uniform(k2, (modes1, modes2), dtype=jnp.float32)
    weights_FFT = (scale * (w_fft_re + 1j * w_fft_im)).astype(jnp.complex64)
    weight_SVD = jax.random.uniform(k3, (modes1, F_channels), dtype=jnp.float32)
    return weights_FFT, weight_SVD


def fold_fft_operator(weights_FFT, modes1, modes2):
    """Fold fft(dim=1) -> einsum('bix,io->box') -> ifft(dim=1, n=modes2) into a
    single real (modes2, modes1) matrix acting on dim 1 of a *real* input."""
    assert modes1 == modes2, "SVD_Block forward requires modes1 == modes2"
    eye = jnp.eye(modes1, dtype=jnp.complex64)
    dft = jnp.fft.fft(eye, axis=0)                                   # DFT matrix
    prod = jnp.matmul(weights_FFT.T, dft,
                      precision=jax.lax.Precision.HIGHEST)           # W^T @ DFT
    T = jnp.fft.ifft(prod, axis=0)                                   # IDFT @ W^T @ DFT
    return jnp.real(T).astype(jnp.float32)                           # (modes2, modes1)


def _block_diag_k(mats):
    """(K, R, C) stacked blocks -> (K*R, K*C) block-diagonal matrix."""
    K, R, C = mats.shape
    eye = jnp.eye(K, dtype=mats.dtype)
    return jnp.einsum('kK,krc->krKc', eye, mats).reshape(K * R, K * C)


def svd_block_forward(x, weights_FFT, weight_SVD, *, block_b=512,
                      compute_dtype=jnp.bfloat16, out_dtype=jnp.float32):
    assert not jnp.iscomplexobj(x), "folded FFT operator assumes a real input x"
    B, M, N = x.shape
    modes1, modes2 = weights_FFT.shape
    assert modes1 == M and weight_SVD.shape == (M, N)

    # Batched SVD of x and SVD of the weight -- no Pallas equivalent for the
    # factorizations; the recombination runs in the kernel.
    u, s, vh = jnp.linalg.svd(x, full_matrices=False)          # (B,M,K),(B,K),(B,K,N)
    wu, ws, wv = jnp.linalg.svd(weight_SVD, full_matrices=False)    # (M,K),(K,),(K,N)
    K = s.shape[-1]
    MN = M * N

    # --- one-time weight transforms ---------------------------------------
    t_real = fold_fft_operator(weights_FFT, modes1, modes2)               # (M, M)
    t_kron = jnp.kron(t_real.T, jnp.eye(N, dtype=jnp.float32))            # (MN, MN)
    wu_scaled = wu * ws[None, :]                                          # fold ws into wu
    p_expand = jnp.kron(jnp.eye(M, dtype=jnp.float32),
                        jnp.ones((1, N), dtype=jnp.float32))              # (M, MN)
    q_tile = jnp.kron(jnp.ones((1, M), dtype=jnp.float32),
                      jnp.eye(N, dtype=jnp.float32))                      # (N, MN)
    ew = wu_scaled.T[:, :, None] * p_expand[None, :, :]                   # (K, M, MN)
    tw = wv[:, :, None] * q_tile[None, :, :]                              # (K, N, MN)
    ew_bd = _block_diag_k(ew)                                             # (K*M, K*MN)
    tw_bd = _block_diag_k(tw)                                             # (K*N, K*MN)

    # --- per-call layout plumbing: one lane-dense slab [x | vh | u*s] -------
    u_scaled = jnp.transpose(u * s[:, None, :], (0, 2, 1)).reshape(B, K * M)
    slab = jnp.concatenate(
        [x.reshape(B, MN), vh.reshape(B, K * N), u_scaled], axis=-1)      # (B, 320)

    # --- batch tiling: big tiles, but keep >= 4 grid steps when possible ----
    #     (>= 2 per v7x TensorCore so double-buffering overlaps DMA on both).
    bb = max(16, (int(block_b) // 16) * 16)
    bt = min(bb, max(16, _round_up(_ceil_div(B, 4), 16)))
    Bp = _round_up(B, bt)
    if Bp != B:
        slab = jnp.pad(slab, ((0, Bp - B), (0, 0)))

    # --- dtype: bf16 tensors halve HBM traffic; all dots accumulate in f32 --
    cd = compute_dtype
    slab = slab.astype(cd)
    ew_bd, tw_bd, t_kron = ew_bd.astype(cd), tw_bd.astype(cd), t_kron.astype(cd)

    out_flat = svd_block_pallas(slab, ew_bd, tw_bd, t_kron, block_b=bt,
                                K=K, M=M, N=N, out_dtype=out_dtype)
    return out_flat[:B].reshape(B, M, N)


# ----------------------------------------------------------------------------
# Pure-JAX reference (mirrors the PyTorch forward) for the sanity check
# ----------------------------------------------------------------------------
def svd_block_reference(x, weights_FFT, weight_SVD, modes2):
    u, s, vh = jnp.linalg.svd(x, full_matrices=False)
    wu, ws, wv = jnp.linalg.svd(weight_SVD, full_matrices=False)
    s = ws * s
    s_diag = jax.vmap(jnp.diag)(s)
    u = u * wu
    vh = vh * wv
    out_svd = jnp.sin(jnp.matmul(jnp.matmul(u, s_diag), vh))
    x_ft = jnp.fft.fft(x, axis=1)
    x_ft = jnp.einsum('bix,io->box', x_ft, weights_FFT)
    out_1 = jnp.real(jnp.fft.ifft(x_ft, axis=1, n=modes2))
    return out_1 + out_svd


if __name__ == "__main__":
    # x is (B, modes1, F_channels); modes1*F_channels = 128 -> fully lane-dense.
    # With B=256 the tile auto-caps at 64 rows -> 4 grid steps (>= 2 per v7x TC),
    # exercising the software pipeline while staying small.
    B, modes1, modes2, F_channels = 256, 8, 8, 16

    key = jax.random.PRNGKey(0)
    kp, kx = jax.random.split(key)
    weights_FFT, weight_SVD = make_params(kp, modes1, modes2, F_channels)
    x = jax.random.normal(kx, (B, modes1, F_channels), dtype=jnp.float32)

    ref = svd_block_reference(x, weights_FFT, weight_SVD, modes2)

    # 1) f32 compute path: checks the kernel math (block-diag placement weights,
    #    folded FFT operator, accumulation) against the plain-JAX reference.
    out_f32 = jax.block_until_ready(
        svd_block_forward(x, weights_FFT, weight_SVD, compute_dtype=jnp.float32))
    assert out_f32.shape == (B, modes2, F_channels)
    err = jnp.abs(out_f32 - ref)
    assert float(jnp.max(err)) < 2e-2 and float(jnp.mean(err)) < 4e-3, \
        "f32 kernel mismatch vs reference"

    # 2) bf16 inputs (default / recommended): tolerance reflects bf16 input
    #    quantization, not kernel error.
    out_bf16 = jax.block_until_ready(
        svd_block_forward(x, weights_FFT, weight_SVD, compute_dtype=jnp.bfloat16))
    assert out_bf16.shape == (B, modes2, F_channels)
    err = jnp.abs(out_bf16 - ref)
    assert float(jnp.mean(err)) < 2.5e-2 and float(jnp.max(err)) < 0.3, \
        "bf16 kernel error too large vs reference"

    # 3) bf16 output path (halves HBM write-back; most valuable on v5e).
    out_bf16o = jax.block_until_ready(
        svd_block_forward(x, weights_FFT, weight_SVD,
                          compute_dtype=jnp.bfloat16, out_dtype=jnp.bfloat16))
    assert out_bf16o.dtype == jnp.bfloat16
    err = jnp.abs(out_bf16o.astype(jnp.float32) - ref)
    assert float(jnp.max(err)) < 0.35, "bf16-output kernel error too large"

    print("KERNEL_OK")
</pallas_src>

<mosaic_0001>
module attributes {stable_mosaic.version = 11 : i64} {
  func.func @svd_block_kernel(%arg0: i32, %arg1: memref<64x320xf32, #tpu.memory_space<vmem>>, %arg2: memref<64x1024xf32, #tpu.memory_space<vmem>>, %arg3: memref<128x1024xf32, #tpu.memory_space<vmem>>, %arg4: memref<128x128xf32, #tpu.memory_space<vmem>>, %arg5: memref<64x128xf32, #tpu.memory_space<vmem>>) attributes {dimension_semantics = [#tpu.dimension_semantics<parallel>], iteration_bounds = array<i64: 4>, scalar_prefetch = 0 : i64, scratch_operands = 0 : i64, tpu.core_type = #tpu.core_type<tc>, window_params = [{transform_indices = @transform_0, window_bounds = array<i64: 64, 320>}, {pipeline_mode = #tpu.pipeline_mode<synchronous>, transform_indices = @transform_1, window_bounds = array<i64: 64, 1024>}, {pipeline_mode = #tpu.pipeline_mode<synchronous>, transform_indices = @transform_2, window_bounds = array<i64: 128, 1024>}, {pipeline_mode = #tpu.pipeline_mode<synchronous>, transform_indices = @transform_3, window_bounds = array<i64: 128, 128>}, {transform_indices = @transform_4, window_bounds = array<i64: 64, 128>}]} {
    %c0 = arith.constant 0 : index
    %c0_0 = arith.constant 0 : index
    %0 = vector.load %arg1[%c0, %c0_0] : memref<64x320xf32, #tpu.memory_space<vmem>>, vector<64x320xf32>
    %1 = vector.extract_strided_slice %0 {offsets = [0, 0], sizes = [64, 128], strides = [1, 1]} : vector<64x320xf32> to vector<64x128xf32>
    %2 = vector.extract_strided_slice %0 {offsets = [0, 128], sizes = [64, 128], strides = [1, 1]} : vector<64x320xf32> to vector<64x128xf32>
    %3 = vector.extract_strided_slice %0 {offsets = [0, 256], sizes = [64, 64], strides = [1, 1]} : vector<64x320xf32> to vector<64x64xf32>
    %c0_1 = arith.constant 0 : index
    %c0_2 = arith.constant 0 : index
    %4 = vector.load %arg2[%c0_1, %c0_2] : memref<64x1024xf32, #tpu.memory_space<vmem>>, vector<64x1024xf32>
    %cst = arith.constant dense<0.000000e+00> : vector<64x1024xf32>
    %5 = tpu.matmul %3, %4, %cst {dimension_numbers = #tpu.dot_dimension_numbers<[1], [0], [0], [1], [0, 0, 1, 1], [], []>} : vector<64x64xf32>, vector<64x1024xf32>, vector<64x1024xf32> -> vector<64x1024xf32>
    %c0_3 = arith.constant 0 : index
    %c0_4 = arith.constant 0 : index
    %6 = vector.load %arg3[%c0_3, %c0_4] : memref<128x1024xf32, #tpu.memory_space<vmem>>, vector<128x1024xf32>
    %cst_5 = arith.constant dense<0.000000e+00> : vector<64x1024xf32>
    %7 = tpu.matmul %2, %6, %cst_5 {dimension_numbers = #tpu.dot_dimension_numbers<[1], [0], [0], [1], [0, 0, 1, 1], [], []>} : vector<64x128xf32>, vector<128x1024xf32>, vector<64x1024xf32> -> vector<64x1024xf32>
    %8 = vector.extract_strided_slice %5 {offsets = [0, 0], sizes = [64, 128], strides = [1, 1]} : vector<64x1024xf32> to vector<64x128xf32>
    %9 = vector.extract_strided_slice %7 {offsets = [0, 0], sizes = [64, 128], strides = [1, 1]} : vector<64x1024xf32> to vector<64x128xf32>
    %10 = arith.mulf %8, %9 : vector<64x128xf32>
    %11 = vector.extract_strided_slice %5 {offsets = [0, 128], sizes = [64, 128], strides = [1, 1]} : vector<64x1024xf32> to vector<64x128xf32>
    %12 = vector.extract_strided_slice %7 {offsets = [0, 128], sizes = [64, 128], strides = [1, 1]} : vector<64x1024xf32> to vector<64x128xf32>
    %13 = arith.mulf %11, %12 : vector<64x128xf32>
    %14 = arith.addf %10, %13 : vector<64x128xf32>
    %15 = vector.extract_strided_slice %5 {offsets = [0, 256], sizes = [64, 128], strides = [1, 1]} : vector<64x1024xf32> to vector<64x128xf32>
    %16 = vector.extract_strided_slice %7 {offsets = [0, 256], sizes = [64, 128], strides = [1, 1]} : vector<64x1024xf32> to vector<64x128xf32>
    %17 = arith.mulf %15, %16 : vector<64x128xf32>
    %18 = arith.addf %14, %17 : vector<64x128xf32>
    %19 = vector.extract_strided_slice %5 {offsets = [0, 384], sizes = [64, 128], strides = [1, 1]} : vector<64x1024xf32> to vector<64x128xf32>
    %20 = vector.extract_strided_slice %7 {offsets = [0, 384], sizes = [64, 128], strides = [1, 1]} : vector<64x1024xf32> to vector<64x128xf32>
    %21 = arith.mulf %19, %20 : vector<64x128xf32>
    %22 = arith.addf %18, %21 : vector<64x128xf32>
    %23 = vector.extract_strided_slice %5 {offsets = [0, 512], sizes = [64, 128], strides = [1, 1]} : vector<64x1024xf32> to vector<64x128xf32>
    %24 = vector.extract_strided_slice %7 {offsets = [0, 512], sizes = [64, 128], strides = [1, 1]} : vector<64x1024xf32> to vector<64x128xf32>
    %25 = arith.mulf %23, %24 : vector<64x128xf32>
    %26 = arith.addf %22, %25 : vector<64x128xf32>
    %27 = vector.extract_strided_slice %5 {offsets = [0, 640], sizes = [64, 128], strides = [1, 1]} : vector<64x1024xf32> to vector<64x128xf32>
    %28 = vector.extract_strided_slice %7 {offsets = [0, 640], sizes = [64, 128], strides = [1, 1]} : vector<64x1024xf32> to vector<64x128xf32>
    %29 = arith.mulf %27, %28 : vector<64x128xf32>
    %30 = arith.addf %26, %29 : vector<64x128xf32>
    %31 = vector.extract_strided_slice %5 {offsets = [0, 768], sizes = [64, 128], strides = [1, 1]} : vector<64x1024xf32> to vector<64x128xf32>
    %32 = vector.extract_strided_slice %7 {offsets = [0, 768], sizes = [64, 128], strides = [1, 1]} : vector<64x1024xf32> to vector<64x128xf32>
    %33 = arith.mulf %31, %32 : vector<64x128xf32>
    %34 = arith.addf %30, %33 : vector<64x128xf32>
    %35 = vector.extract_strided_slice %5 {offsets = [0, 896], sizes = [64, 128], strides = [1, 1]} : vector<64x1024xf32> to vector<64x128xf32>
    %36 = vector.extract_strided_slice %7 {offsets = [0, 896], sizes = [64, 128], strides = [1, 1]} : vector<64x1024xf32> to vector<64x128xf32>
    %37 = arith.mulf %35, %36 : vector<64x128xf32>
    %38 = arith.addf %34, %37 : vector<64x128xf32>
    %39 = math.sin %38 : vector<64x128xf32>
    %c0_6 = arith.constant 0 : index
    %c0_7 = arith.constant 0 : index
    %40 = vector.load %arg4[%c0_6, %c0_7] : memref<128x128xf32, #tpu.memory_space<vmem>>, vector<128x128xf32>
    %cst_8 = arith.constant dense<0.000000e+00> : vector<64x128xf32>
    %41 = tpu.matmul %1, %40, %cst_8 {dimension_numbers = #tpu.dot_dimension_numbers<[1], [0], [0], [1], [0, 0, 1, 1], [], []>} : vector<64x128xf32>, vector<128x128xf32>, vector<64x128xf32> -> vector<64x128xf32>
    %42 = arith.addf %39, %41 : vector<64x128xf32>
    %c0_9 = arith.constant 0 : index
    %c0_10 = arith.constant 0 : index
    %43 = vector.load %arg5[%c0_9, %c0_10] : memref<64x128xf32, #tpu.memory_space<vmem>>, vector<64x128xf32>
    tpu.vector_store %arg5[%c0_9, %c0_10], %42 {strides = array<i32>} : memref<64x128xf32, #tpu.memory_space<vmem>>, vector<64x128xf32>,
    return
  }
  func.func @transform_0(%arg0: i32) -> (i32, i32) {
    %c0_i32 = arith.constant 0 : i32
    %c0_i32_0 = arith.constant 0 : i32
    return %arg0, %c0_i32 : i32, i32
  }
  func.func @transform_1(%arg0: i32) -> (i32, i32) {
    %c0_i32 = arith.constant 0 : i32
    %c0_i32_0 = arith.constant 0 : i32
    %c0_i32_1 = arith.constant 0 : i32
    return %c0_i32, %c0_i32_0 : i32, i32
  }
  func.func @transform_2(%arg0: i32) -> (i32, i32) {
    %c0_i32 = arith.constant 0 : i32
    %c0_i32_0 = arith.constant 0 : i32
    %c0_i32_1 = arith.constant 0 : i32
    return %c0_i32, %c0_i32_0 : i32, i32
  }
  func.func @transform_3(%arg0: i32) -> (i32, i32) {
    %c0_i32 = arith.constant 0 : i32
    %c0_i32_0 = arith.constant 0 : i32
    %c0_i32_1 = arith.constant 0 : i32
    return %c0_i32, %c0_i32_0 : i32, i32
  }
  func.func @transform_4(%arg0: i32) -> (i32, i32) {
    %c0_i32 = arith.constant 0 : i32
    %c0_i32_0 = arith.constant 0 : i32
    return %arg0, %c0_i32 : i32, i32
  }
}

</mosaic_0001>

<bundles_post_ra>
// kernel: tpu_custom_call.1
= control target key start
LH: loop header
LB: loop body
LE: loop exit
PB: predicated region body
PF: predicated region fallthrough
CT: control target
= control target key end

     0   :  { %9 = vsyncpa [#allocation3], 0  ;;  %s5180_s0 = inlined_call_operand.vmem [shape: f32[256,320], index: 0, kind: input, shape index: {}]   ;;  %s5181_s1 = inlined_call_operand.hbm [shape: f32[64,1024], index: 1, kind: input, shape index: {}]   ;;  %s5182_s2 = inlined_call_operand.vmem [shape: f32[128,1024], index: 2, kind: input, shape index: {}]   ;;  %s5183_s3 = inlined_call_operand.vmem [shape: f32[128,128], index: 3, kind: input, shape index: {}]   ;;  %s5184_s4 = inlined_call_operand.hbm [shape: f32[256,128], index: 4, kind: output, shape index: {}]  }
   0x1   :  { %10 = vsyncpa [#allocation4], 0 }
   0x2   :  { %12 = vsyncpa [#allocation4 + $0x1], 0  ;;  %s3186_s15 = smov 0   ;;  %s3188_s16 = smov 0  }
   0x3   :  { %s3190_s17 = smov 0   ;;  %s3192_s18 = smov 0  }
   0x4 LB: > { %s3207_s19 = sadd.s32 4294967295, %s3146_s18   ;;  %s2539_s20 = sadd.s32 4294967294, %s3146_s18   ;;  %s3146_s18 = sphi %s3192_s18, %s5325_s18   ;;  %s3142_s17 = sphi %s3190_s17, %s5324_s17   ;;  %s3138_s16 = sphi %s3188_s16, %s5323_s16   ;;  %s3134_s15 = sphi %s3186_s15, %s5322_s15  }
   0x5   : > { %s3211_s21 = sadd.s32 1, %s3146_s18   ;;  %s114_s22 = sadd.s32 1, %s3142_s17 }
   0x6   : > { %s111_s23 = ssub.s32 %s3146_s18, %s3211_s21  ;;  %p124_p0 = scmp.ne.s32.totalorder %s3142_s17, %s3138_s16 }
   0x7   : > { %p112_p1 = scmp.eq.s32.totalorder %s111_s23, 0  ;;  %p125_p2 = scmp.eq.s32.totalorder %s3207_s19, 3 }
   0x8   : > { %p130_p3 = scmp.ne.s32.totalorder %s3138_s16, %s3134_s15  ;;  %p131_p4 = scmp.eq.s32.totalorder %s2539_s20, 3 }
   0x9   : > { %s3222_s24 = scalar_select %p112_p1, %s3142_s17, %s114_s22  }
   0xa   : > { %p3224_p5 = por %p125_p2, %p124_p0  ;;  %p3228_p6 = por %p131_p4, %p130_p3 }
   0xb   : > { %p2540_p7 = scmp.ge.s32.totalorder %s3146_s18, 1  ;;  %p138_p8 = scmp.lt.s32.totalorder %s3146_s18, 5 }
   0xc   : > { %s5220_s25 = scalar_select %p3224_p5, 1, 0 }
   0xd   : > { %s5221_s26 = scalar_select %p3228_p6, 1, 0 }
   0xe   : > { %p5185_p9 = scmp.eq.s32.totalorder %s3207_s19, 0  ;;  %p3235_p10 = pnand %p2540_p7, %p138_p8 }
   0xf   : > { %s3148_s28 = smov [#allocation2]   ;;  %s3052_s7 = scalar_lea.hbm %s5181_s1, 8192 }
  0x10   : > { %s5222_s27 = scalar_select %p3235_p10, 1, 0 }
  0x11   : > { %s150_s29 = sshll.u32 %s3148_s28, 4  ;;  %p2965_p11 = pneg %p3235_p10  ;;  %s151_s29 = int_to_ptr.vmem [resolvable:$true] %s150_s29 }
  0x12   : > { %p3053_p13 = scmp.ne.s32.totalorder %s5181_s1, %s3052_s7  ;;  %p3059_p3 = scmp.lt.u32.totalorder %s3052_s7, %s5181_s1 }
  0x13   : > { %p3243_p12 = pnand %p5185_p9, %p2965_p11 }
  0x15   : > { %p3054_p0 = pneg %p3243_p12 }
  0x17   : > { %p3055_p1 = pnand %p3054_p0, %p3053_p13 }
  0x19   : > { %p3056_p2 = pneg %p3055_p1 }
  0x1b   : > { %p3061_p4 = pnand %p3059_p3, %p3056_p2 }
  0x1d   : > { %3064 = shalt.err (!%p3061_p4)
}
  0x1e   : > { %s3065_s12 = scalar_lea.vmem %s151_s29, 8192  ;;  %p3073_p9 = scmp.lt.s32.totalorder %s151_s29, %s151_s29 }
  0x1f   : > { %p3066_p7 = scmp.ne.s32.totalorder %s151_s29, %s3065_s12  ;;  %p3074_p6 = scmp.lt.s32.totalorder %s3065_s12, %s3065_s12 }
  0x21   : > { %p3068_p8 = pnand %p3066_p7, %p3054_p0  ;;  %p3075_p5 = por %p3074_p6, %p3073_p9 }
  0x23   : > { %p3069_p11 = pneg %p3068_p8 }
  0x25   : > { %p3076_p10 = pnand %p3075_p5, %p3069_p11 }
  0x27   : > { %3079 = shalt.err (!%p3076_p10)
}
  0x28   : > { %s3149_s13 = smov 1024   ;;  %s3150_s14 = smov 64  }
  0x29   : > { %2968 = dma.hbm_to_vmem [thread:$0]  (!%p3243_p12), %s5181_s1, 8192, %s151_s29, [#allocation3], %s3149_s13, %s3149_s13, %s3150_s14  }
  0x2a   : > { %p5224_p13 = scmp.ne.s32.totalorder %s5222_s27, 0 }
  0x2c   : > { %182 = sbr.rel (%p5224_p13) target bundleno = 656 (0x290), region = 36 }
  0x33   : > { %p5225_p1 = scmp.eq.s32.totalorder %s3207_s19, 0 }
  0x35   : > { %3125 = dma.done.wait (%p5225_p1), [#allocation3], 8192   ;;  %p5226_p0 = pmov %p5225_p1 }
  0x36   : > { %v3151_v0 = vmov 0.0   ;;  %s2546_s23 = sshll.u32 %s3207_s19, 3  ;;  %v242_v1 = vld [vmem:[#allocation2 + $0x8] sm:$0xff]  ;;  %v244_v3 = vld [vmem:[#allocation2 + $0x18] sm:$0xff]  ;;  %v241_v6 = vld [vmem:[#allocation2] sm:$0xff]  ;;  %vm305_vm0 = vcmask 523264  }
  0x37   : > { %3127 = vsyncadd (%p5226_p0), [#allocation3], 4294959104  ;;  %394 = vmatprep.mubr.f32.mxu0 %v3151_v0  ;;  %507 = vmatprep.mubr.f32.mxu1 %v3151_v0  ;;  %v250_v2 = vld [vmem:[#allocation2 + $0x48] sm:$0xff]  ;;  %v252_v5 = vld [vmem:[#allocation2 + $0x58] sm:$0xff]  ;;  %p3274_p5 = scmp.lt.s32.totalorder %s2546_s23, 31  ;;  %s2617_s9 = sshll.u32 %s3207_s19, 10 }
  0x38   : > { %v2686_v4 = vpack.c.bf16 %v250_v2, %v242_v1  ;;  %v249_v7 = vld [vmem:[#allocation2 + $0x40] sm:$0xff]  ;;  %v2702_v8 = vpack.c.bf16 %v252_v5, %v244_v3  ;;  %v243_v10 = vld [vmem:[#allocation2 + $0x10] sm:$0xff]  ;;  %v258_v12 = vld [vmem:[#allocation2 + $0x88] sm:$0xff]  ;;  %s5134_s12 = scalar_lea.hbm %s5184_s4, %s2617_s9  ;;  %p5320_p9 = scmp.ne.s32.totalorder %s5220_s25, 0 }
  0x39   : > { %v2688_v9 = vpack.c.bf16 %v249_v7, %v241_v6  ;;  %v251_v11 = vld [vmem:[#allocation2 + $0x50] sm:$0xff]  ;;  %v266_v14 = vld [vmem:[#allocation2 + $0xc8] sm:$0xff]  ;;  %v260_v15 = vld [vmem:[#allocation2 + $0x98] sm:$0xff]  ;;  %s5327_s23 = smov (!%p3274_p5, %s2546_s23), 31  ;;  %s3158_s14 = smov [#allocation5]  }
  0x3a   : > { %2687 = vmatprep.subr.bf16.mxu0 %v2686_v4  ;;  %v2704_v13 = vpack.c.bf16 %v251_v11, %v243_v10  ;;  %v268_v16 = vld [vmem:[#allocation2 + $0xd8] sm:$0xff]  ;;  %2703 = vmatprep.subr.bf16.mxu1 %v2702_v8  ;;  %v2690_v17 = vpack.c.bf16 %v266_v14, %v258_v12  ;;  %v257_v19 = vld [vmem:[#allocation2 + $0x80] sm:$0xff]  ;;  %v259_v21 = vld [vmem:[#allocation2 + $0x90] sm:$0xff]  ;;  %s2926_s28 = smul.u32 24, %s5327_s23  ;;  %s3084_s20 = sshll.u32 %s3158_s14, 4  ;;  %s3085_s20 = int_to_ptr.vmem [resolvable:$false] %s3084_s20 }
  0x3b   : > { %2689 = vmatpush1.bf16.msra.mxu0 %v2688_v9  ;;  %v2706_v18 = vpack.c.bf16 %v268_v16, %v260_v15  ;;  %v265_v20 = vld [vmem:[#allocation2 + $0xc0] sm:$0xff]  ;;  %v267_v23 = vld [vmem:[#allocation2 + $0xd0] sm:$0xff]  ;;  %v274_v24 = vld [vmem:[#allocation2 + $0x108] sm:$0xff]  ;;  %s3086_s22 = scalar_lea.vmem %s3085_s20, 2048 }
  0x3c   : > { %2705 = vmatpush1.bf16.msra.mxu1 %v2704_v13  ;;  %v2692_v22 = vpack.c.bf16 %v265_v20, %v257_v19  ;;  %v282_v25 = vld [vmem:[#allocation2 + $0x148] sm:$0xff]  ;;  %2691 = vmatprep.subr.bf16.mxu0 %v2690_v17  ;;  %v2708_v26 = vpack.c.bf16 %v267_v23, %v259_v21  ;;  %v276_v28 = vld [vmem:[#allocation2 + $0x118] sm:$0xff]  ;;  %v273_v30 = vld [vmem:[#allocation2 + $0x100] sm:$0xff]  ;;  %s3288_s5 = scalar_lea.vmem %s5180_s0, %s2926_s28 }
  0x3d   : > { %2707 = vmatprep.subr.bf16.mxu1 %v2706_v18  ;;  %v2694_v27 = vpack.c.bf16 %v282_v25, %v274_v24  ;;  %v284_v29 = vld [vmem:[#allocation2 + $0x158] sm:$0xff]  ;;  %v281_v32 = vld [vmem:[#allocation2 + $0x140] sm:$0xff]  ;;  %v275_v33 = vld [vmem:[#allocation2 + $0x110] sm:$0xff] }
  0x3e   : > { %v2710_v31 = vpack.c.bf16 %v284_v29, %v276_v28  ;;  %v283_v34 = vld [vmem:[#allocation2 + $0x150] sm:$0xff]  ;;  %v2696_v35 = vpack.c.bf16 %v281_v32, %v273_v30  ;;  %v290_v36 = vld [vmem:[#allocation2 + $0x188] sm:$0xff]  ;;  %v292_v38 = vld [vmem:[#allocation2 + $0x198] sm:$0xff] }
  0x3f   : > { %2693 = vmatpush1.bf16.msra.mxu0 %v2692_v22  ;;  %v298_v37 = vld [vmem:[#allocation2 + $0x1c8] sm:$0xff]  ;;  %v2712_v39 = vpack.c.bf16 %v283_v34, %v275_v33  ;;  %v300_v41 = vld [vmem:[#allocation2 + $0x1d8] sm:$0xff]  ;;  %v289_v42 = vld [vmem:[#allocation2 + $0x180] sm:$0xff] }
  0x40   : > { %2709 = vmatpush1.bf16.msra.mxu1 %v2708_v26  ;;  %2695 = vmatprep.subr.bf16.mxu0 %v2694_v27  ;;  %v2698_v40 = vpack.c.bf16 %v298_v37, %v290_v36  ;;  %v297_v43 = vld [vmem:[#allocation2 + $0x1c0] sm:$0xff]  ;;  %v2714_v44 = vpack.c.bf16 %v300_v41, %v292_v38  ;;  %v291_v45 = vld [vmem:[#allocation2 + $0x190] sm:$0xff]  ;;  %v246_v47 = vld [vmem:[#allocation2 + $0x28] sm:$0xff] }
  0x41   : > { %2711 = vmatprep.subr.bf16.mxu1 %v2710_v31  ;;  %v299_v46 = vld [vmem:[#allocation2 + $0x1d0] sm:$0xff]  ;;  %v254_v48 = vld [vmem:[#allocation2 + $0x68] sm:$0xff]  ;;  %v2700_v49 = vpack.c.bf16 %v297_v43, %v289_v42  ;;  %v248_v50 = vld [vmem:[#allocation2 + $0x38] sm:$0xff] }
  0x42   : > { %v2716_v51 = vpack.c.bf16 %v299_v46, %v291_v45  ;;  %v2718_v52 = vpack.c.bf16 %v254_v48, %v246_v47  ;;  %v245_v53 = vld [vmem:[#allocation2 + $0x20] sm:$0xff]  ;;  %v256_v55 = vld [vmem:[#allocation2 + $0x78] sm:$0xff]  ;;  %v247_v57 = vld [vmem:[#allocation2 + $0x30] sm:$0xff] }
  0x43   : > { %2697 = vmatpush1.bf16.msra.mxu0 %v2696_v35  ;;  %v253_v54 = vld [vmem:[#allocation2 + $0x60] sm:$0xff]  ;;  %v2734_v56 = vpack.c.bf16 %v256_v55, %v248_v50  ;;  %v255_v58 = vld [vmem:[#allocation2 + $0x70] sm:$0xff]  ;;  %v262_v59 = vld [vmem:[#allocation2 + $0xa8] sm:$0xff] }
  0x44   : > { %2713 = vmatpush1.bf16.msra.mxu1 %v2712_v39  ;;  %2699 = vmatprep.subr.bf16.mxu0 %v2698_v40  ;;  %v270_v60 = vld [vmem:[#allocation2 + $0xe8] sm:$0xff]  ;;  %v3291_v61 = vld [vmem:[%s3288_s5 + $0x10] sm:$0xff]  ;;  %v2720_v62 = vpack.c.bf16 %v253_v54, %v245_v53  ;;  %v264_v63 = vld [vmem:[#allocation2 + $0xb8] sm:$0xff]  ;;  %v2736_v2 = vpack.c.bf16 %v255_v58, %v247_v57 }
  0x45   : > { %2715 = vmatprep.subr.bf16.mxu1 %v2714_v44  ;;  %v272_v1 = vld [vmem:[#allocation2 + $0xf8] sm:$0xff]  ;;  %v2722_v3 = vpack.c.bf16 %v270_v60, %v262_v59  ;;  %v261_v4 = vld [vmem:[#allocation2 + $0xa0] sm:$0xff]  ;;  %v263_v6 = vld [vmem:[#allocation2 + $0xb0] sm:$0xff] }
  0x46   : > { %v269_v5 = vld [vmem:[#allocation2 + $0xe0] sm:$0xff]  ;;  %v2738_v7 = vpack.c.bf16 %v272_v1, %v264_v63  ;;  %v271_v8 = vld [vmem:[#allocation2 + $0xf0] sm:$0xff]  ;;  %v278_v9 = vld [vmem:[#allocation2 + $0x128] sm:$0xff] }
  0x47   : > { %2701 = vmatpush1.bf16.msra.mxu0 %v2700_v49  ;;  %v286_v10 = vld [vmem:[#allocation2 + $0x168] sm:$0xff]  ;;  %v280_v12 = vld [vmem:[#allocation2 + $0x138] sm:$0xff]  ;;  %v2724_v14 = vpack.c.bf16 %v269_v5, %v261_v4  ;;  %v2740_v15 = vpack.c.bf16 %v271_v8, %v263_v6  ;;  %v277_v17 = vld [vmem:[#allocation2 + $0x120] sm:$0xff] }
  0x48   : > { %2717 = vmatpush1.bf16.msra.mxu1 %v2716_v51  ;;  %2719 = vmatprep.subr.bf16.mxu0 %v2718_v52  ;;  %v3298_v11 = vld [vmem:[%s3288_s5 + $0x28] sm:$0xff]  ;;  %v288_v13 = vld [vmem:[#allocation2 + $0x178] sm:$0xff]  ;;  %v2726_v16 = vpack.c.bf16 %v286_v10, %v278_v9  ;;  %v285_v18 = vld [vmem:[#allocation2 + $0x160] sm:$0xff] }
  0x49   : > { %2735 = vmatprep.subr.bf16.mxu1 %v2734_v56  ;;  %v279_v19 = vld [vmem:[#allocation2 + $0x130] sm:$0xff]  ;;  %v2742_v20 = vpack.c.bf16 %v288_v13, %v280_v12  ;;  %v294_v22 = vld [vmem:[#allocation2 + $0x1a8] sm:$0xff]  ;;  %v3308_v24 = vld [vmem:[%s3288_s5 + $0x40] sm:$0xff]  ;;  %v2728_v27 = vpack.c.bf16 %v285_v18, %v277_v17 }
  0x4a   : > { %2548 = vmatmul.mubr.msk.f32.vlgmr.msra.gmra.mrb[0].mxu0 %vm305_vm0, %v3291_v61  ;;  %v287_v21 = vld [vmem:[#allocation2 + $0x170] sm:$0xff]  ;;  %v302_v23 = vld [vmem:[#allocation2 + $0x1e8] sm:$0xff]  ;;  %v296_v25 = vld [vmem:[#allocation2 + $0x1b8] sm:$0xff] }
  0x4b   : > { %2556 = vmatmul.mubr.msk.f32.vlgmr.msra.gmra.mrb[0].mxu1 %vm305_vm0, %v3291_v61  ;;  %2721 = vmatpush1.bf16.msra.mxu0 %v2720_v62  ;;  %v304_v26 = vld [vmem:[#allocation2 + $0x1f8] sm:$0xff]  ;;  %v2744_v28 = vpack.c.bf16 %v287_v21, %v279_v19  ;;  %v2730_v29 = vpack.c.bf16 %v302_v23, %v294_v22  ;;  %v293_v30 = vld [vmem:[#allocation2 + $0x1a0] sm:$0xff]  ;;  %v295_v32 = vld [vmem:[#allocation2 + $0x1b0] sm:$0xff] }
  0x4c   : > { %400 = vmatprep.mubr.f32.mxu0 %v3151_v0  ;;  %513 = vmatprep.mubr.f32.mxu1 %v3151_v0  ;;  %v301_v31 = vld [vmem:[#allocation2 + $0x1e0] sm:$0xff]  ;;  %v2746_v33 = vpack.c.bf16 %v304_v26, %v296_v25  ;;  %v303_v34 = vld [vmem:[#allocation2 + $0x1f0] sm:$0xff]  ;;  %v783_v35 = vld [vmem:[%s5182_s2 + $0x8] sm:$0xff] }
  0x4d   : > { %2737 = vmatpush1.bf16.msra.mxu1 %v2736_v2  ;;  %2723 = vmatprep.subr.bf16.mxu0 %v2722_v3  ;;  %v791_v36 = vld [vmem:[%s5182_s2 + $0x48] sm:$0xff]  ;;  %v3323_v37 = vld [vmem:[%s3288_s5 + $0x58] sm:$0xff]  ;;  %v2732_v40 = vpack.c.bf16 %v301_v31, %v293_v30  ;;  %v2748_v41 = vpack.c.bf16 %v303_v34, %v295_v32  ;;  %v3338_v44 = vld [vmem:[%s3288_s5 + $0x70] sm:$0xff] }
  0x4e   : > { %2549 = vmatmul.mubr.msk.f32.gmra.mrb[2].mxu0 %vm305_vm0, %v3298_v11  ;;  %2739 = vmatprep.subr.bf16.mxu1 %v2738_v7  ;;  %v785_v38 = vld [vmem:[%s5182_s2 + $0x18] sm:$0xff]  ;;  %v2750_v42 = vpack.c.bf16 %v791_v36, %v783_v35  ;;  %v3347_v45 = vld [vmem:[%s3288_s5 + $0x88] sm:$0xff]  ;;  %v3356_v46 = vld [vmem:[%s3288_s5 + $0xa0] sm:$0xff] }
  0x4f   : > { %2557 = vmatmul.mubr.msk.f32.gmra.mrb[2].mxu1 %vm305_vm0, %v3298_v11  ;;  %406 = vmatprep.mubr.f32.mxu0 %v3151_v0  ;;  %v793_v39 = vld [vmem:[%s5182_s2 + $0x58] sm:$0xff]  ;;  %v782_v48 = vld [vmem:[%s5182_s2] sm:$0xff]  ;;  %v784_v50 = vld [vmem:[%s5182_s2 + $0x10] sm:$0xff] }
  0x50   : > { %519 = vmatprep.mubr.f32.mxu1 %v3151_v0  ;;  %2725 = vmatpush1.bf16.msra.mxu0 %v2724_v14  ;;  %v2782_v43 = vpack.c.bf16 %v793_v39, %v785_v38  ;;  %v3365_v47 = vld [vmem:[%s3288_s5 + $0xb8] sm:$0xff]  ;;  %v790_v49 = vld [vmem:[%s5182_s2 + $0x40] sm:$0xff]  ;;  %v792_v51 = vld [vmem:[%s5182_s2 + $0x50] sm:$0xff] }
  0x51   : > { %2741 = vmatpush1.bf16.msra.mxu1 %v2740_v15  ;;  %2727 = vmatprep.subr.bf16.mxu0 %v2726_v16  ;;  %v799_v52 = vld [vmem:[%s5182_s2 + $0x88] sm:$0xff]  ;;  %v2752_v54 = vpack.c.bf16 %v790_v49, %v782_v48  ;;  %v801_v55 = vld [vmem:[%s5182_s2 + $0x98] sm:$0xff]  ;;  %v2784_v57 = vpack.c.bf16 %v792_v51, %v784_v50  ;;  %v798_v58 = vld [vmem:[%s5182_s2 + $0x80] sm:$0xff] }
  0x52   : > { %2550 = vmatmul.mubr.msk.f32.gmra.mrb[4].mxu0 %vm305_vm0, %v3308_v24  ;;  %2743 = vmatprep.subr.bf16.mxu1 %v2742_v20  ;;  %v807_v53 = vld [vmem:[%s5182_s2 + $0xc8] sm:$0xff]  ;;  %v809_v56 = vld [vmem:[%s5182_s2 + $0xd8] sm:$0xff]  ;;  %v806_v59 = vld [vmem:[%s5182_s2 + $0xc0] sm:$0xff] }
  0x53   : > { %2558 = vmatmul.mubr.msk.f32.gmra.mrb[4].mxu1 %vm305_vm0, %v3308_v24  ;;  %412 = vmatprep.mubr.f32.mxu0 %v3151_v0  ;;  %v2754_v60 = vpack.c.bf16 %v807_v53, %v799_v52  ;;  %v800_v62 = vld [vmem:[%s5182_s2 + $0x90] sm:$0xff]  ;;  %v2786_v1 = vpack.c.bf16 %v809_v56, %v801_v55  ;;  %v815_v2 = vld [vmem:[%s5182_s2 + $0x108] sm:$0xff]  ;;  %v2756_v4 = vpack.c.bf16 %v806_v59, %v798_v58  ;;  %v817_v5 = vld [vmem:[%s5182_s2 + $0x118] sm:$0xff] }
  0x54   : > { %525 = vmatprep.mubr.f32.mxu1 %v3151_v0  ;;  %2729 = vmatpush1.bf16.msra.mxu0 %v2728_v27  ;;  %v808_v63 = vld [vmem:[%s5182_s2 + $0xd0] sm:$0xff]  ;;  %v823_v3 = vld [vmem:[%s5182_s2 + $0x148] sm:$0xff]  ;;  %v825_v6 = vld [vmem:[%s5182_s2 + $0x158] sm:$0xff] }
  0x55   : > { %2745 = vmatpush1.bf16.msra.mxu1 %v2744_v28  ;;  %2731 = vmatprep.subr.bf16.mxu0 %v2730_v29  ;;  %v2788_v7 = vpack.c.bf16 %v808_v63, %v800_v62  ;;  %v814_v8 = vld [vmem:[%s5182_s2 + $0x100] sm:$0xff]  ;;  %v2758_v9 = vpack.c.bf16 %v823_v3, %v815_v2  ;;  %v816_v10 = vld [vmem:[%s5182_s2 + $0x110] sm:$0xff]  ;;  %v2790_v13 = vpack.c.bf16 %v825_v6, %v817_v5  ;;  %v831_v14 = vld [vmem:[%s5182_s2 + $0x188] sm:$0xff] }
  0x56   : > { %2551 = vmatmul.mubr.msk.f32.gmra.mrb[6].mxu0 %vm305_vm0, %v3323_v37  ;;  %2747 = vmatprep.subr.bf16.mxu1 %v2746_v33  ;;  %v824_v12 = vld [vmem:[%s5182_s2 + $0x150] sm:$0xff]  ;;  %v839_v15 = vld [vmem:[%s5182_s2 + $0x1c8] sm:$0xff]  ;;  %v833_v17 = vld [vmem:[%s5182_s2 + $0x198] sm:$0xff] }
  0x57   : > { %2559 = vmatmul.mubr.msk.f32.gmra.mrb[6].mxu1 %vm305_vm0, %v3323_v37  ;;  %418 = vmatprep.mubr.f32.mxu0 %v3151_v0  ;;  %v841_v18 = vld [vmem:[%s5182_s2 + $0x1d8] sm:$0xff]  ;;  %v2792_v19 = vpack.c.bf16 %v824_v12, %v816_v10  ;;  %v830_v20 = vld [vmem:[%s5182_s2 + $0x180] sm:$0xff]  ;;  %v2762_v21 = vpack.c.bf16 %v839_v15, %v831_v14  ;;  %v832_v22 = vld [vmem:[%s5182_s2 + $0x190] sm:$0xff] }
  0x58   : > { %531 = vmatprep.mubr.f32.mxu1 %v3151_v0  ;;  %2733 = vmatpush1.bf16.msra.mxu0 %v2732_v40  ;;  %v840_v23 = vld [vmem:[%s5182_s2 + $0x1d0] sm:$0xff]  ;;  %v2794_v25 = vpack.c.bf16 %v841_v18, %v833_v17  ;;  %v847_v26 = vld [vmem:[%s5182_s2 + $0x208] sm:$0xff]  ;;  %v849_v29 = vld [vmem:[%s5182_s2 + $0x218] sm:$0xff] }
  0x59   : > { %2749 = vmatpush1.bf16.msra.mxu1 %v2748_v41  ;;  %2751 = vmatprep.subr.bf16.mxu0 %v2750_v42  ;;  %v855_v27 = vld [vmem:[%s5182_s2 + $0x248] sm:$0xff]  ;;  %v857_v30 = vld [vmem:[%s5182_s2 + $0x258] sm:$0xff]  ;;  %v2796_v31 = vpack.c.bf16 %v840_v23, %v832_v22  ;;  %v846_v32 = vld [vmem:[%s5182_s2 + $0x200] sm:$0xff] }
  0x5a   : > { %2552 = vmatmul.mubr.msk.f32.gmra.mrb[8].mxu0 %vm305_vm0, %v3338_v44  ;;  %2783 = vmatprep.subr.bf16.mxu1 %v2782_v43  ;;  %v2766_v33 = vpack.c.bf16 %v855_v27, %v847_v26  ;;  %v848_v34 = vld [vmem:[%s5182_s2 + $0x210] sm:$0xff]  ;;  %v2798_v36 = vpack.c.bf16 %v857_v30, %v849_v29  ;;  %v863_v38 = vld [vmem:[%s5182_s2 + $0x288] sm:$0xff]  ;;  %v865_v41 = vld [vmem:[%s5182_s2 + $0x298] sm:$0xff] }
  0x5b   : > { %2560 = vmatmul.mubr.msk.f32.gmra.mrb[8].mxu1 %vm305_vm0, %v3338_v44  ;;  %424 = vmatprep.mubr.f32.mxu0 %v3151_v0  ;;  %v856_v35 = vld [vmem:[%s5182_s2 + $0x250] sm:$0xff]  ;;  %v871_v39 = vld [vmem:[%s5182_s2 + $0x2c8] sm:$0xff]  ;;  %v873_v42 = vld [vmem:[%s5182_s2 + $0x2d8] sm:$0xff] }
  0x5c   : > { %537 = vmatprep.mubr.f32.mxu1 %v3151_v0  ;;  %v2800_v43 = vpack.c.bf16 %v856_v35, %v848_v34  ;;  %v862_v48 = vld [vmem:[%s5182_s2 + $0x280] sm:$0xff]  ;;  %v2770_v49 = vpack.c.bf16 %v871_v39, %v863_v38  ;;  %v864_v50 = vld [vmem:[%s5182_s2 + $0x290] sm:$0xff]  ;;  %v2802_v52 = vpack.c.bf16 %v873_v42, %v865_v41  ;;  %v879_v53 = vld [vmem:[%s5182_s2 + $0x308] sm:$0xff] }
  0x5d   : > { %v872_v51 = vld [vmem:[%s5182_s2 + $0x2d0] sm:$0xff]  ;;  %v881_v56 = vld [vmem:[%s5182_s2 + $0x318] sm:$0xff]  ;;  %v878_v59 = vld [vmem:[%s5182_s2 + $0x300] sm:$0xff] }
  0x5e   : > { %2553 = vmatmul.mubr.msk.f32.gmra.mrb[10].mxu0 %vm305_vm0, %v3347_v45  ;;  %v2804_v58 = vpack.c.bf16 %v872_v51, %v864_v50  ;;  %v880_v62 = vld [vmem:[%s5182_s2 + $0x310] sm:$0xff]  ;;  %v895_v2 = vld [vmem:[%s5182_s2 + $0x388] sm:$0xff]  ;;  %v897_v5 = vld [vmem:[%s5182_s2 + $0x398] sm:$0xff] }
  0x5f   : > { %2561 = vmatmul.mubr.msk.f32.gmra.mrb[10].mxu1 %vm305_vm0, %v3347_v45  ;;  %430 = vmatprep.mubr.f32.mxu0 %v3151_v0  ;;  %v888_v63 = vld [vmem:[%s5182_s2 + $0x350] sm:$0xff]  ;;  %v903_v3 = vld [vmem:[%s5182_s2 + $0x3c8] sm:$0xff]  ;;  %v905_v6 = vld [vmem:[%s5182_s2 + $0x3d8] sm:$0xff] }
  0x60   : > { %543 = vmatprep.mubr.f32.mxu1 %v3151_v0  ;;  %v904_v10 = vld [vmem:[%s5182_s2 + $0x3d0] sm:$0xff]  ;;  %v2810_v12 = vpack.c.bf16 %v905_v6, %v897_v5  ;;  %v795_v14 = vld [vmem:[%s5182_s2 + $0x68] sm:$0xff]  ;;  %v797_v17 = vld [vmem:[%s5182_s2 + $0x78] sm:$0xff] }
  0x61   : > { %v803_v23 = vld [vmem:[%s5182_s2 + $0xa8] sm:$0xff]  ;;  %v813_v29 = vld [vmem:[%s5182_s2 + $0xf8] sm:$0xff]  ;;  %v3662_v38 = vld [vmem:[%s3288_s5 + $0x20] sm:$0xff] }
  0x62   : > { %2554 = vmatmul.mubr.msk.f32.gmra.mrb[12].mxu0 %vm305_vm0, %v3356_v46  ;;  %v3631_v26 = vld [vmem:[%s3288_s5 + $0x8] sm:$0xff]  ;;  %v829_v41 = vld [vmem:[%s5182_s2 + $0x178] sm:$0xff]  ;;  %v828_v50 = vld [vmem:[%s5182_s2 + $0x170] sm:$0xff] }
  0x63   : > { %2562 = vmatmul.mubr.msk.f32.gmra.mrb[12].mxu1 %vm305_vm0, %v3356_v46  ;;  %436 = vmatprep.mubr.f32.mxu0 %v3151_v0  ;;  %v819_v35 = vld [vmem:[%s5182_s2 + $0x128] sm:$0xff]  ;;  %v853_v6 = vld [vmem:[%s5182_s2 + $0x238] sm:$0xff] }
  0x64   : > { %549 = vmatprep.mubr.f32.mxu1 %v3151_v0 }
  0x66   : > { %2555 = vmatmul.mubr.msk.f32.gmra.mrb[14].mxu0 %vm305_vm0, %v3365_v47 }
  0x67   : > { %2563 = vmatmul.mubr.msk.f32.gmra.mrb[14].mxu1 %vm305_vm0, %v3365_v47  ;;  %620 = vmatprep.mubr.f32.mxu0 %v3151_v0 }
  0x68   : > { %733 = vmatprep.mubr.f32.mxu1 %v3151_v0 }
  0x6a   : > { %2564 = vmatmul.mubr.msk.f32.vlgmr.msra.gmra.mrb[16].mxu0 %vm305_vm0, %v3291_v61 }
  0x6b   : > { %2572 = vmatmul.mubr.msk.f32.vlgmr.msra.gmra.mrb[16].mxu1 %vm305_vm0, %v3291_v61  ;;  %2753 = vmatpush1.bf16.msra.mxu0 %v2752_v54  ;;  %v822_v61 = vld [vmem:[%s5182_s2 + $0x140] sm:$0xff]  ;;  %v887_v54 = vld [vmem:[%s5182_s2 + $0x348] sm:$0xff] }
  0x6c   : > { %2785 = vmatpush1.bf16.msra.mxu1 %v2784_v57  ;;  %626 = vmatprep.mubr.f32.mxu0 %v3151_v0  ;;  %v2760_v16 = vpack.c.bf16 %v822_v61, %v814_v8  ;;  %v889_v57 = vld [vmem:[%s5182_s2 + $0x358] sm:$0xff]  ;;  %v894_v8 = vld [vmem:[%s5182_s2 + $0x380] sm:$0xff]  ;;  %v2778_v61 = vpack.c.bf16 %v903_v3, %v895_v2  ;;  %v851_v2 = vld [vmem:[%s5182_s2 + $0x228] sm:$0xff] }
  0x6d   : > { %739 = vmatprep.mubr.f32.mxu1 %v3151_v0  ;;  %2755 = vmatprep.subr.bf16.mxu0 %v2754_v60  ;;  %v2774_v60 = vpack.c.bf16 %v887_v54, %v879_v53  ;;  %v843_v53 = vld [vmem:[%s5182_s2 + $0x1e8] sm:$0xff]  ;;  %v3693_v54 = vld [vmem:[%s3288_s5 + $0x38] sm:$0xff] }
  0x6e   : > { %2565 = vmatmul.mubr.msk.f32.gmra.mrb[18].mxu0 %vm305_vm0, %v3298_v11  ;;  %2787 = vmatprep.subr.bf16.mxu1 %v2786_v1  ;;  %v2806_v1 = vpack.c.bf16 %v889_v57, %v881_v56  ;;  %v837_v56 = vld [vmem:[%s5182_s2 + $0x1b8] sm:$0xff]  ;;  %v859_v3 = vld [vmem:[%s5182_s2 + $0x268] sm:$0xff] }
  0x6f   : > { %2573 = vmatmul.mubr.msk.f32.gmra.mrb[18].mxu1 %vm305_vm0, %v3298_v11  ;;  %2757 = vmatpush1.bf16.msra.mxu0 %v2756_v4  ;;  %v838_v11 = vld [vmem:[%s5182_s2 + $0x1c0] sm:$0xff]  ;;  %v845_v57 = vld [vmem:[%s5182_s2 + $0x1f8] sm:$0xff] }
  0x70   : > { %2789 = vmatpush1.bf16.msra.mxu1 %v2788_v7  ;;  %632 = vmatprep.mubr.f32.mxu0 %v3151_v0  ;;  %v2764_v28 = vpack.c.bf16 %v838_v11, %v830_v20  ;;  %v2808_v7 = vpack.c.bf16 %v888_v63, %v880_v62  ;;  %v788_v11 = vld [vmem:[%s5182_s2 + $0x30] sm:$0xff] }
  0x71   : > { %745 = vmatprep.mubr.f32.mxu1 %v3151_v0  ;;  %2759 = vmatprep.subr.bf16.mxu0 %v2758_v9  ;;  %v896_v9 = vld [vmem:[%s5182_s2 + $0x390] sm:$0xff] }
  0x72   : > { %2566 = vmatmul.mubr.msk.f32.gmra.mrb[20].mxu0 %vm305_vm0, %v3308_v24  ;;  %2791 = vmatprep.subr.bf16.mxu1 %v2790_v13  ;;  %v787_v13 = vld [vmem:[%s5182_s2 + $0x28] sm:$0xff]  ;;  %v2812_v18 = vpack.c.bf16 %v904_v10, %v896_v9  ;;  %v836_v62 = vld [vmem:[%s5182_s2 + $0x1b0] sm:$0xff]  ;;  %v2830_v9 = vpack.c.bf16 %v859_v3, %v851_v2  ;;  %v2318_v3 = vld [vmem:[%s5183_s3 + $0x20] sm:$0xff] }
  0x73   : > { %2574 = vmatmul.mubr.msk.f32.gmra.mrb[20].mxu1 %vm305_vm0, %v3308_v24  ;;  %2761 = vmatpush1.bf16.msra.mxu0 %v2760_v16  ;;  %v854_v24 = vld [vmem:[%s5182_s2 + $0x240] sm:$0xff]  ;;  %v789_v16 = vld [vmem:[%s5182_s2 + $0x38] sm:$0xff]  ;;  %v2814_v20 = vpack.c.bf16 %v795_v14, %v787_v13  ;;  %v844_v63 = vld [vmem:[%s5182_s2 + $0x1f0] sm:$0xff] }
  0x74   : > { %2793 = vmatpush1.bf16.msra.mxu1 %v2792_v19  ;;  %638 = vmatprep.mubr.f32.mxu0 %v3151_v0  ;;  %v2768_v40 = vpack.c.bf16 %v854_v24, %v846_v32  ;;  %v786_v19 = vld [vmem:[%s5182_s2 + $0x20] sm:$0xff]  ;;  %v2846_v22 = vpack.c.bf16 %v797_v17, %v789_v16  ;;  %v804_v24 = vld [vmem:[%s5182_s2 + $0xb0] sm:$0xff]  ;;  %v867_v14 = vld [vmem:[%s5182_s2 + $0x2a8] sm:$0xff] }
  0x75   : > { %751 = vmatprep.mubr.f32.mxu1 %v3151_v0  ;;  %2763 = vmatprep.subr.bf16.mxu0 %v2762_v21  ;;  %v796_v21 = vld [vmem:[%s5182_s2 + $0x70] sm:$0xff]  ;;  %v3755_v16 = vld [vmem:[%s3288_s5 + $0x68] sm:$0xff] }
  0x76   : > { %2567 = vmatmul.mubr.msk.f32.gmra.mrb[22].mxu0 %vm305_vm0, %v3323_v37  ;;  %2795 = vmatprep.subr.bf16.mxu1 %v2794_v25  ;;  %v811_v25 = vld [vmem:[%s5182_s2 + $0xe8] sm:$0xff]  ;;  %v2848_v30 = vpack.c.bf16 %v796_v21, %v788_v11  ;;  %v852_v10 = vld [vmem:[%s5182_s2 + $0x230] sm:$0xff]  ;;  %v874_v11 = vld [vmem:[%s5182_s2 + $0x2e0] sm:$0xff] }
  0x77   : > { %2575 = vmatmul.mubr.msk.f32.gmra.mrb[22].mxu1 %vm305_vm0, %v3323_v37  ;;  %2765 = vmatpush1.bf16.msra.mxu0 %v2764_v28  ;;  %v870_v37 = vld [vmem:[%s5182_s2 + $0x2c0] sm:$0xff]  ;;  %v805_v28 = vld [vmem:[%s5182_s2 + $0xb8] sm:$0xff]  ;;  %v2818_v32 = vpack.c.bf16 %v811_v25, %v803_v23  ;;  %v876_v23 = vld [vmem:[%s5182_s2 + $0x2f0] sm:$0xff] }
  0x78   : > { %2797 = vmatpush1.bf16.msra.mxu1 %v2796_v31  ;;  %644 = vmatprep.mubr.f32.mxu0 %v3151_v0  ;;  %v2772_v55 = vpack.c.bf16 %v870_v37, %v862_v48  ;;  %v810_v31 = vld [vmem:[%s5182_s2 + $0xe0] sm:$0xff]  ;;  %v2850_v34 = vpack.c.bf16 %v813_v29, %v805_v28  ;;  %v891_v28 = vld [vmem:[%s5182_s2 + $0x368] sm:$0xff] }
  0x79   : > { %757 = vmatprep.mubr.f32.mxu1 %v3151_v0  ;;  %2767 = vmatprep.subr.bf16.mxu0 %v2766_v33  ;;  %v812_v33 = vld [vmem:[%s5182_s2 + $0xf0] sm:$0xff]  ;;  %v826_v48 = vld [vmem:[%s5182_s2 + $0x160] sm:$0xff] }
  0x7a   : > { %2568 = vmatmul.mubr.msk.f32.gmra.mrb[24].mxu0 %vm305_vm0, %v3338_v44  ;;  %2799 = vmatprep.subr.bf16.mxu1 %v2798_v36  ;;  %v827_v36 = vld [vmem:[%s5182_s2 + $0x168] sm:$0xff]  ;;  %v2852_v42 = vpack.c.bf16 %v812_v33, %v804_v24  ;;  %v3786_v29 = vld [vmem:[%s3288_s5 + $0x80] sm:$0xff] }
  0x7b   : > { %2576 = vmatmul.mubr.msk.f32.gmra.mrb[24].mxu1 %vm305_vm0, %v3338_v44  ;;  %2769 = vmatpush1.bf16.msra.mxu0 %v2768_v40  ;;  %v886_v44 = vld [vmem:[%s5182_s2 + $0x340] sm:$0xff]  ;;  %v821_v40 = vld [vmem:[%s5182_s2 + $0x138] sm:$0xff]  ;;  %v2822_v37 = vpack.c.bf16 %v827_v36, %v819_v35  ;;  %v884_v35 = vld [vmem:[%s5182_s2 + $0x330] sm:$0xff] }
  0x7c   : > { %2801 = vmatpush1.bf16.msra.mxu1 %v2800_v43  ;;  %650 = vmatprep.mubr.f32.mxu0 %v3151_v0  ;;  %v2776_v4 = vpack.c.bf16 %v886_v44, %v878_v59  ;;  %v818_v43 = vld [vmem:[%s5182_s2 + $0x120] sm:$0xff]  ;;  %v2854_v51 = vpack.c.bf16 %v829_v41, %v821_v40  ;;  %v892_v36 = vld [vmem:[%s5182_s2 + $0x370] sm:$0xff]  ;;  %v899_v40 = vld [vmem:[%s5182_s2 + $0x3a8] sm:$0xff] }
  0x7d   : > { %763 = vmatprep.mubr.f32.mxu1 %v3151_v0  ;;  %2771 = vmatprep.subr.bf16.mxu0 %v2770_v49  ;;  %v820_v49 = vld [vmem:[%s5182_s2 + $0x130] sm:$0xff]  ;;  %v834_v59 = vld [vmem:[%s5182_s2 + $0x1a0] sm:$0xff]  ;;  %v907_v41 = vld [vmem:[%s5182_s2 + $0x3e8] sm:$0xff] }
  0x7e   : > { %2569 = vmatmul.mubr.msk.f32.gmra.mrb[26].mxu0 %vm305_vm0, %v3347_v45  ;;  %2803 = vmatprep.subr.bf16.mxu1 %v2802_v52  ;;  %v835_v52 = vld [vmem:[%s5182_s2 + $0x1a8] sm:$0xff]  ;;  %v842_v44 = vld [vmem:[%s5182_s2 + $0x1e0] sm:$0xff] }
  0x7f   : > { %2577 = vmatmul.mubr.msk.f32.gmra.mrb[26].mxu1 %vm305_vm0, %v3347_v45  ;;  %2773 = vmatpush1.bf16.msra.mxu0 %v2772_v55  ;;  %v902_v45 = vld [vmem:[%s5182_s2 + $0x3c0] sm:$0xff]  ;;  %v2824_v55 = vpack.c.bf16 %v826_v48, %v818_v43  ;;  %v2828_v5 = vpack.c.bf16 %v842_v44, %v834_v59  ;;  %v901_v48 = vld [vmem:[%s5182_s2 + $0x3b8] sm:$0xff]  ;;  %v3848_v59 = vld [vmem:[%s3288_s5 + $0xb0] sm:$0xff] }
  0x80   : > { %2805 = vmatpush1.bf16.msra.mxu1 %v2804_v58  ;;  %656 = vmatprep.mubr.f32.mxu0 %v3151_v0  ;;  %v2780_v15 = vpack.c.bf16 %v902_v45, %v894_v8  ;;  %v2856_v58 = vpack.c.bf16 %v828_v50, %v820_v49  ;;  %v2860_v8 = vpack.c.bf16 %v844_v63, %v836_v62  ;;  %v850_v45 = vld [vmem:[%s5182_s2 + $0x220] sm:$0xff]  ;;  %v2316_v63 = vld [vmem:[%s5183_s3 + $0x10] sm:$0xff] }
  0x81   : > { %769 = vmatprep.mubr.f32.mxu1 %v3151_v0  ;;  %2775 = vmatprep.subr.bf16.mxu0 %v2774_v60  ;;  %v2826_v60 = vpack.c.bf16 %v843_v53, %v835_v52  ;;  %v882_v24 = vld [vmem:[%s5182_s2 + $0x320] sm:$0xff]  ;;  %v2872_v49 = vpack.c.bf16 %v892_v36, %v884_v35  ;;  %v2842_v52 = vpack.c.bf16 %v907_v41, %v899_v40  ;;  %v900_v53 = vld [vmem:[%s5182_s2 + $0x3b0] sm:$0xff] }
  0x82   : > { %2570 = vmatmul.mubr.msk.f32.gmra.mrb[28].mxu0 %vm305_vm0, %v3356_v46  ;;  %2807 = vmatprep.subr.bf16.mxu1 %v2806_v1  ;;  %v2858_v1 = vpack.c.bf16 %v845_v57, %v837_v56  ;;  %v890_v33 = vld [vmem:[%s5182_s2 + $0x360] sm:$0xff] }
  0x83   : > { %2578 = vmatmul.mubr.msk.f32.gmra.mrb[28].mxu1 %vm305_vm0, %v3356_v46  ;;  %2777 = vmatpush1.bf16.msra.mxu0 %v2776_v4  ;;  %v794_v46 = vld [vmem:[%s5182_s2 + $0x60] sm:$0xff]  ;;  %v3724_v4 = vld [vmem:[%s3288_s5 + $0x50] sm:$0xff]  ;;  %v2840_v43 = vpack.c.bf16 %v890_v33, %v882_v24 }
  0x84   : > { %2809 = vmatpush1.bf16.msra.mxu1 %v2808_v7  ;;  %662 = vmatprep.mubr.f32.mxu0 %v3151_v0  ;;  %v2816_v27 = vpack.c.bf16 %v794_v46, %v786_v19  ;;  %v861_v7 = vld [vmem:[%s5182_s2 + $0x278] sm:$0xff]  ;;  %v898_v50 = vld [vmem:[%s5182_s2 + $0x3a0] sm:$0xff] }
  0x85   : > { %775 = vmatprep.mubr.f32.mxu1 %v3151_v0  ;;  %2779 = vmatprep.subr.bf16.mxu0 %v2778_v61  ;;  %v858_v61 = vld [vmem:[%s5182_s2 + $0x260] sm:$0xff]  ;;  %v2862_v13 = vpack.c.bf16 %v861_v7, %v853_v6  ;;  %v877_v19 = vld [vmem:[%s5182_s2 + $0x2f8] sm:$0xff]  ;;  %v2320_v7 = vld [vmem:[%s5183_s3 + $0x30] sm:$0xff] }
  0x86   : > { %2571 = vmatmul.mubr.msk.f32.gmra.mrb[30].mxu0 %vm305_vm0, %v3365_v47  ;;  %2811 = vmatprep.subr.bf16.mxu1 %v2810_v12  ;;  %v860_v12 = vld [vmem:[%s5182_s2 + $0x270] sm:$0xff]  ;;  %v2832_v17 = vpack.c.bf16 %v858_v61, %v850_v45  ;;  %v2314_v57 = vld [vmem:[%s5183_s3] sm:$0xff]  ;;  %v2323_v61 = vld [vmem:[%s5183_s3 + $0x48] sm:$0xff] }
  0x87   : > { %2579 = vmatmul.mubr.msk.f32.gmra.mrb[30].mxu1 %vm305_vm0, %v3365_v47  ;;  %2781 = vmatpush1.bf16.msra.mxu0 %v2780_v15  ;;  %v802_v47 = vld [vmem:[%s5182_s2 + $0xa0] sm:$0xff]  ;;  %v875_v15 = vld [vmem:[%s5182_s2 + $0x2e8] sm:$0xff]  ;;  %v2864_v46 = vpack.c.bf16 %v860_v12, %v852_v10  ;;  %v2325_v10 = vld [vmem:[%s5183_s3 + $0x58] sm:$0xff] }
  0x88   : > { %2813 = vmatpush1.bf16.msra.mxu1 %v2812_v18  ;;  %974 = vmatprep.mubr.f32.mxu0 %v3151_v0  ;;  %v2820_v39 = vpack.c.bf16 %v810_v31, %v802_v47  ;;  %v869_v18 = vld [vmem:[%s5182_s2 + $0x2b8] sm:$0xff]  ;;  %v2834_v21 = vpack.c.bf16 %v875_v15, %v867_v14  ;;  %v2322_v45 = vld [vmem:[%s5183_s3 + $0x40] sm:$0xff]  ;;  %v2328_v14 = vld [vmem:[%s5183_s3 + $0x70] sm:$0xff] }
  0x89   : > { %1087 = vmatprep.mubr.f32.mxu1 %v3151_v0  ;;  %2815 = vmatprep.subr.bf16.mxu0 %v2814_v20  ;;  %v866_v20 = vld [vmem:[%s5182_s2 + $0x2a0] sm:$0xff]  ;;  %v2866_v25 = vpack.c.bf16 %v877_v19, %v869_v18  ;;  %v885_v47 = vld [vmem:[%s5182_s2 + $0x338] sm:$0xff] }
  0x8a   : > { %975 = vmatmul.mubr.f32.vlgmr.msra.gmra.mrb[32].mxu0 %v3631_v26  ;;  %2847 = vmatprep.subr.bf16.mxu1 %v2846_v22  ;;  %v868_v22 = vld [vmem:[%s5182_s2 + $0x2b0] sm:$0xff]  ;;  %v893_v31 = vld [vmem:[%s5182_s2 + $0x378] sm:$0xff]  ;;  %v2326_v12 = vld [vmem:[%s5183_s3 + $0x60] sm:$0xff] }
  0x8b   : > { %1088 = vmatmul.mubr.f32.vlgmr.msra.gmra.mrb[32].mxu1 %v3631_v26  ;;  %2817 = vmatpush1.bf16.msra.mxu0 %v2816_v27  ;;  %v883_v27 = vld [vmem:[%s5182_s2 + $0x328] sm:$0xff]  ;;  %v2329_v15 = vld [vmem:[%s5183_s3 + $0x78] sm:$0xff]  ;;  %v229_v18 = vld [vmem:[%s3288_s5 + $0x60] sm:$0xff] }
  0x8c   : > { %2849 = vmatpush1.bf16.msra.mxu1 %v2848_v30  ;;  %980 = vmatprep.mubr.f32.mxu0 %v3151_v0  ;;  %v2836_v30 = vpack.c.bf16 %v874_v11, %v866_v20  ;;  %v220_v19 = vld [vmem:[%s3288_s5 + $0x18] sm:$0xff]  ;;  %v235_v20 = vld [vmem:[%s3288_s5 + $0x90] sm:$0xff]  ;;  %v226_v11 = vld [vmem:[%s3288_s5 + $0x48] sm:$0xff] }
  0x8d   : > { %1093 = vmatprep.mubr.f32.mxu1 %v3151_v0  ;;  %2819 = vmatprep.subr.bf16.mxu0 %v2818_v32  ;;  %v2868_v32 = vpack.c.bf16 %v876_v23, %v868_v22 }
  0x8e   : > { %981 = vmatmul.mubr.f32.gmra.mrb[34].mxu0 %v3662_v38  ;;  %2851 = vmatprep.subr.bf16.mxu1 %v2850_v34  ;;  %v2838_v34 = vpack.c.bf16 %v891_v28, %v883_v27 }
  0x8f   : > { %1094 = vmatmul.mubr.f32.gmra.mrb[34].mxu1 %v3662_v38  ;;  %2821 = vmatpush1.bf16.msra.mxu0 %v2820_v39  ;;  %v2870_v39 = vpack.c.bf16 %v893_v31, %v885_v47 }
  0x90   : > { %2853 = vmatpush1.bf16.msra.mxu1 %v2852_v42  ;;  %986 = vmatprep.mubr.f32.mxu0 %v3151_v0  ;;  %v3817_v42 = vld [vmem:[%s3288_s5 + $0x98] sm:$0xff] }
  0x91   : > { %1099 = vmatprep.mubr.f32.mxu1 %v3151_v0  ;;  %2823 = vmatprep.subr.bf16.mxu0 %v2822_v37  ;;  %v909_v37 = vld [vmem:[%s5182_s2 + $0x3f8] sm:$0xff] }
  0x92   : > { %987 = vmatmul.mubr.f32.gmra.mrb[36].mxu0 %v3693_v54  ;;  %2855 = vmatprep.subr.bf16.mxu1 %v2854_v51  ;;  %v906_v51 = vld [vmem:[%s5182_s2 + $0x3e0] sm:$0xff]  ;;  %v2874_v56 = vpack.c.bf16 %v909_v37, %v901_v48 }
  0x93   : > { %1100 = vmatmul.mubr.f32.gmra.mrb[36].mxu1 %v3693_v54  ;;  %2825 = vmatpush1.bf16.msra.mxu0 %v2824_v55  ;;  %v908_v55 = vld [vmem:[%s5182_s2 + $0x3f0] sm:$0xff]  ;;  %v2844_v44 = vpack.c.bf16 %v906_v51, %v898_v50 }
  0x94   : > { %2857 = vmatpush1.bf16.msra.mxu1 %v2856_v58  ;;  %992 = vmatprep.mubr.f32.mxu0 %v3151_v0  ;;  %v2315_v58 = vld [vmem:[%s5183_s3 + $0x8] sm:$0xff] }
  0x95   : > { %1105 = vmatprep.mubr.f32.mxu1 %v3151_v0  ;;  %2827 = vmatprep.subr.bf16.mxu0 %v2826_v60  ;;  %v2876_v60 = vpack.c.bf16 %v908_v55, %v900_v53  ;;  %v2878_v62 = vpack.c.bf16 %v2315_v58, %v2314_v57 }
  0x96   : > { %993 = vmatmul.mubr.f32.gmra.mrb[38].mxu0 %v3724_v4  ;;  %2859 = vmatprep.subr.bf16.mxu1 %v2858_v1  ;;  %v2317_v1 = vld [vmem:[%s5183_s3 + $0x18] sm:$0xff] }
  0x97   : > { %1106 = vmatmul.mubr.f32.gmra.mrb[38].mxu1 %v3724_v4  ;;  %2829 = vmatpush1.bf16.msra.mxu0 %v2828_v5  ;;  %v2882_v2 = vpack.c.bf16 %v2317_v1, %v2316_v63  ;;  %v2319_v5 = vld [vmem:[%s5183_s3 + $0x28] sm:$0xff] }
  0x98   : > { %2861 = vmatpush1.bf16.msra.mxu1 %v2860_v8  ;;  %998 = vmatprep.mubr.f32.mxu0 %v3151_v0  ;;  %v2886_v6 = vpack.c.bf16 %v2319_v5, %v2318_v3  ;;  %v2321_v8 = vld [vmem:[%s5183_s3 + $0x38] sm:$0xff] }
  0x99   : > { %1111 = vmatprep.mubr.f32.mxu1 %v3151_v0  ;;  %2831 = vmatprep.subr.bf16.mxu0 %v2830_v9  ;;  %v2324_v9 = vld [vmem:[%s5183_s3 + $0x50] sm:$0xff] }
  0x9a   : > { %999 = vmatmul.mubr.f32.gmra.mrb[40].mxu0 %v3755_v16  ;;  %2863 = vmatprep.subr.bf16.mxu1 %v2862_v13  ;;  %v2327_v13 = vld [vmem:[%s5183_s3 + $0x68] sm:$0xff] }
  0x9b   : > { %1112 = vmatmul.mubr.f32.gmra.mrb[40].mxu1 %v3755_v16  ;;  %2833 = vmatpush1.bf16.msra.mxu0 %v2832_v17  ;;  %v217_v17 = vld [vmem:[%s3288_s5] sm:$0xff] }
  0x9c   : > { %2865 = vmatpush1.bf16.msra.mxu1 %v2864_v46  ;;  %1004 = vmatprep.mubr.f32.mxu0 %v3151_v0  ;;  %v223_v46 = vld [vmem:[%s3288_s5 + $0x30] sm:$0xff] }
  0x9d   : > { %1117 = vmatprep.mubr.f32.mxu1 %v3151_v0  ;;  %2835 = vmatprep.subr.bf16.mxu0 %v2834_v21  ;;  %v238_v21 = vld [vmem:[%s3288_s5 + $0xa8] sm:$0xff] }
  0x9e   : > { %1005 = vmatmul.mubr.f32.gmra.mrb[42].mxu0 %v3786_v29  ;;  %2867 = vmatprep.subr.bf16.mxu1 %v2866_v25 }
  0x9f   : > { %1118 = vmatmul.mubr.f32.gmra.mrb[42].mxu1 %v3786_v29  ;;  %2837 = vmatpush1.bf16.msra.mxu0 %v2836_v30 }
  0xa0   : > { %2869 = vmatpush1.bf16.msra.mxu1 %v2868_v32  ;;  %1010 = vmatprep.mubr.f32.mxu0 %v3151_v0 }
  0xa1   : > { %1123 = vmatprep.mubr.f32.mxu1 %v3151_v0  ;;  %2839 = vmatprep.subr.bf16.mxu0 %v2838_v34 }
  0xa2   : > { %1011 = vmatmul.mubr.f32.gmra.mrb[44].mxu0 %v3817_v42  ;;  %2871 = vmatprep.subr.bf16.mxu1 %v2870_v39 }
  0xa3   : > { %1124 = vmatmul.mubr.f32.gmra.mrb[44].mxu1 %v3817_v42  ;;  %2841 = vmatpush1.bf16.msra.mxu0 %v2840_v43 }
  0xa4   : > { %2873 = vmatpush1.bf16.msra.mxu1 %v2872_v49  ;;  %1016 = vmatprep.mubr.f32.mxu0 %v3151_v0 }
  0xa5   : > { %1129 = vmatprep.mubr.f32.mxu1 %v3151_v0  ;;  %2843 = vmatprep.subr.bf16.mxu0 %v2842_v52 }
  0xa6   : > { %1017 = vmatmul.mubr.f32.gmra.mrb[46].mxu0 %v3848_v59  ;;  %2875 = vmatprep.subr.bf16.mxu1 %v2874_v56 }
  0xa7   : > { %1130 = vmatmul.mubr.f32.gmra.mrb[46].mxu1 %v3848_v59  ;;  %2845 = vmatpush1.bf16.msra.mxu0 %v2844_v44 }
  0xa8   : > { %2877 = vmatpush1.bf16.msra.mxu1 %v2876_v60  ;;  %1200 = vmatprep.mubr.f32.mxu0 %v3151_v0 }
  0xa9   : > { %1313 = vmatprep.mubr.f32.mxu1 %v3151_v0  ;;  %2879 = vmatprep.subr.bf16.mxu0 %v2878_v62 }
  0xaa   : > { %1201 = vmatmul.mubr.f32.vlgmr.msra.gmra.mrb[48].mxu0 %v3631_v26  ;;  %2910 = vmatprep.subr.bf16.mxu1 %v2878_v62 }
  0xab   : > { %1314 = vmatmul.mubr.f32.vlgmr.msra.gmra.mrb[48].mxu1 %v3631_v26  ;;  %1206 = vmatprep.mubr.f32.mxu0 %v3151_v0  ;;  %v2890_v26 = vpack.c.bf16 %v2321_v8, %v2320_v7 }
  0xac   : > { %1319 = vmatprep.mubr.f32.mxu1 %v3151_v0  ;;  %2881 = vmatpush3.bf16.msra.mxu0 %v2878_v62 }
  0xad   : > { %2883 = vmatprep.subr.bf16.mxu0 %v2882_v2  ;;  %2918 = vmatpush3.bf16.msra.mxu1 %v2878_v62 }
  0xae   : > { %1207 = vmatmul.mubr.f32.gmra.mrb[50].mxu0 %v3662_v38  ;;  %2911 = vmatprep.subr.bf16.mxu1 %v2882_v2 }
  0xaf   : > { %1320 = vmatmul.mubr.f32.gmra.mrb[50].mxu1 %v3662_v38  ;;  %1212 = vmatprep.mubr.f32.mxu0 %v3151_v0  ;;  %v2894_v38 = vpack.c.bf16 %v2323_v61, %v2322_v45 }
  0xb0   : > { %1325 = vmatprep.mubr.f32.mxu1 %v3151_v0  ;;  %2885 = vmatpush3.bf16.msra.mxu0 %v2882_v2 }
  0xb1   : > { %2887 = vmatprep.subr.bf16.mxu0 %v2886_v6  ;;  %2919 = vmatpush3.bf16.msra.mxu1 %v2882_v2 }
  0xb2   : > { %1213 = vmatmul.mubr.f32.gmra.mrb[52].mxu0 %v3693_v54  ;;  %2912 = vmatprep.subr.bf16.mxu1 %v2886_v6 }
  0xb3   : > { %1326 = vmatmul.mubr.f32.gmra.mrb[52].mxu1 %v3693_v54  ;;  %1218 = vmatprep.mubr.f32.mxu0 %v3151_v0  ;;  %v2898_v54 = vpack.c.bf16 %v2325_v10, %v2324_v9 }
  0xb4   : > { %1331 = vmatprep.mubr.f32.mxu1 %v3151_v0  ;;  %2889 = vmatpush3.bf16.msra.mxu0 %v2886_v6 }
  0xb5   : > { %2891 = vmatprep.subr.bf16.mxu0 %v2890_v26  ;;  %2920 = vmatpush3.bf16.msra.mxu1 %v2886_v6 }
  0xb6   : > { %1219 = vmatmul.mubr.f32.gmra.mrb[54].mxu0 %v3724_v4  ;;  %2913 = vmatprep.subr.bf16.mxu1 %v2890_v26 }
  0xb7   : > { %1332 = vmatmul.mubr.f32.gmra.mrb[54].mxu1 %v3724_v4  ;;  %1224 = vmatprep.mubr.f32.mxu0 %v3151_v0  ;;  %v2902_v4 = vpack.c.bf16 %v2327_v13, %v2326_v12 }
  0xb8   : > { %1337 = vmatprep.mubr.f32.mxu1 %v3151_v0  ;;  %2893 = vmatpush3.bf16.msra.mxu0 %v2890_v26 }
  0xb9   : > { %2895 = vmatprep.subr.bf16.mxu0 %v2894_v38  ;;  %2921 = vmatpush3.bf16.msra.mxu1 %v2890_v26 }
  0xba   : > { %1225 = vmatmul.mubr.f32.gmra.mrb[56].mxu0 %v3755_v16  ;;  %2914 = vmatprep.subr.bf16.mxu1 %v2894_v38 }
  0xbb   : > { %1338 = vmatmul.mubr.f32.gmra.mrb[56].mxu1 %v3755_v16  ;;  %1230 = vmatprep.mubr.f32.mxu0 %v3151_v0  ;;  %v2906_v16 = vpack.c.bf16 %v2329_v15, %v2328_v14 }
  0xbc   : > { %1343 = vmatprep.mubr.f32.mxu1 %v3151_v0  ;;  %2897 = vmatpush3.bf16.msra.mxu0 %v2894_v38 }
  0xbd   : > { %2899 = vmatprep.subr.bf16.mxu0 %v2898_v54  ;;  %2922 = vmatpush3.bf16.msra.mxu1 %v2894_v38 }
  0xbe   : > { %1231 = vmatmul.mubr.f32.gmra.mrb[58].mxu0 %v3786_v29  ;;  %2915 = vmatprep.subr.bf16.mxu1 %v2898_v54 }
  0xbf   : > { %1344 = vmatmul.mubr.f32.gmra.mrb[58].mxu1 %v3786_v29  ;;  %1236 = vmatprep.mubr.f32.mxu0 %v3151_v0 }
  0xc0   : > { %1349 = vmatprep.mubr.f32.mxu1 %v3151_v0  ;;  %2901 = vmatpush3.bf16.msra.mxu0 %v2898_v54 }
  0xc1   : > { %2903 = vmatprep.subr.bf16.mxu0 %v2902_v4  ;;  %2923 = vmatpush3.bf16.msra.mxu1 %v2898_v54 }
  0xc2   : > { %1237 = vmatmul.mubr.f32.gmra.mrb[60].mxu0 %v3817_v42  ;;  %2916 = vmatprep.subr.bf16.mxu1 %v2902_v4 }
  0xc3   : > { %1350 = vmatmul.mubr.f32.gmra.mrb[60].mxu1 %v3817_v42  ;;  %1242 = vmatprep.mubr.f32.mxu0 %v3151_v0 }
  0xc4   : > { %1355 = vmatprep.mubr.f32.mxu1 %v3151_v0  ;;  %2905 = vmatpush3.bf16.msra.mxu0 %v2902_v4  ;;  %v232_v0 = vld [vmem:[%s3288_s5 + $0x78] sm:$0xff]  ;;  %s206_s5 = sand.u32 1, %s3138_s16  }
  0xc5   : > { %2907 = vmatprep.subr.bf16.mxu0 %v2906_v16  ;;  %2924 = vmatpush3.bf16.msra.mxu1 %v2902_v4  ;;  %s2545_s6 = sshll.u32 %s206_s5, 6  ;;  %s5139_s13 = scalar_lea.sflag [#allocation4], %s206_s5 }
  0xc6   : > { %1243 = vmatmul.mubr.f32.gmra.mrb[62].mxu0 %v3848_v59  ;;  %2917 = vmatprep.subr.bf16.mxu1 %v2906_v16  ;;  %s4734_s7 = scalar_lea.vmem [#allocation5], %s2545_s6 }
  0xc7   : > { %1356 = vmatmul.mubr.f32.gmra.mrb[62].mxu1 %v3848_v59  ;;  %2674 = vmatprep.mubr.f32.mxu0 %v217_v17  ;;  %s2465_s8 = sshll.u32 %s4734_s7, 4  ;;  %s5128_s8 = int_to_ptr.vmem [resolvable:$true] %s2465_s8 }
  0xc8   : > { %2909 = vmatpush3.bf16.msra.mxu0 %v2906_v16  ;;  %2680 = vmatprep.mubr.f32.mxu1 %v229_v18  ;;  %s3080_s19 = scalar_lea.vmem %s5128_s8, 1024  ;;  %p3087_p2 = scmp.lt.s32.totalorder %s5128_s8, %s3085_s20 }
  0xc9   : > { %2925 = vmatpush3.bf16.msra.mxu1 %v2906_v16  ;;  %p3081_p6 = scmp.ne.s32.totalorder %s5128_s8, %s3080_s19  ;;  %p3088_p3 = scmp.lt.s32.totalorder %s3086_s22, %s3080_s19 }
  0xcb   : > { %2675 = vmatmul.mubr.f32.vlgmr.msra.gmra.mrb[64].mxu0 %v220_v19  ;;  %p3082_p10 = pnand %p3081_p6, %p5320_p9  ;;  %p3089_p4 = por %p3088_p3, %p3087_p2 }
  0xcc   : > { %2677 = vmatprep.mubr.f32.mxu0 %v223_v46  ;;  %2681 = vmatmul.mubr.f32.vlgmr.msra.gmra.mrb[64].mxu1 %v232_v0 }
  0xcd   : > { %2683 = vmatprep.mubr.f32.mxu1 %v235_v20  ;;  %p3083_p12 = pneg %p3082_p10 }
  0xcf   : > { %2678 = vmatmul.mubr.f32.gmra.mrb[66].mxu0 %v226_v11  ;;  %p3090_p7 = pnand %p3089_p4, %p3083_p12 }
  0xd0   : > { %2684 = vmatmul.mubr.f32.gmra.mrb[66].mxu1 %v238_v21 }
 0x11d   : > { %v3936_v22 = vpop.f32.mrb[0].mxu0 }
 0x11e   : > { %v3938_v23 = vpop.f32.mrb[1].mxu0  ;;  %v3940_v25 = vpop.f32.mrb[0].mxu1 }
 0x11f   : > { %v3942_v27 = vpop.f32.mrb[1].mxu1 }
 0x121   : > { %v3944_v28 = vpop.f32.mrb[2].mxu0 }
 0x122   : > { %v3946_v29 = vpop.f32.mrb[3].mxu0  ;;  %v3948_v30 = vpop.f32.mrb[2].mxu1 }
 0x123   : > { %v3950_v47 = vpop.f32.mrb[3].mxu1 }
 0x125   : > { %v3952_v31 = vpop.f32.mrb[4].mxu0 }
 0x126   : > { %v3954_v32 = vpop.f32.mrb[5].mxu0  ;;  %v3956_v24 = vpop.f32.mrb[4].mxu1 }
 0x127   : > { %v3958_v33 = vpop.f32.mrb[5].mxu1 }
 0x129   : > { %v3960_v34 = vpop.f32.mrb[6].mxu0 }
 0x12a   : > { %v3962_v35 = vpop.f32.mrb[7].mxu0  ;;  %v3964_v36 = vpop.f32.mrb[6].mxu1 }
 0x12b   : > { %v3966_v39 = vpop.f32.mrb[7].mxu1 }
 0x12d   : > { %v3968_v40 = vpop.f32.mrb[8].mxu0 }
 0x12e   : > { %v3970_v41 = vpop.f32.mrb[9].mxu0  ;;  %v3972_v42 = vpop.f32.mrb[8].mxu1 }
 0x12f   : > { %v3974_v43 = vpop.f32.mrb[9].mxu1 }
 0x131   : > { %v3976_v48 = vpop.f32.mrb[10].mxu0 }
 0x132   : > { %v3978_v37 = vpop.f32.mrb[11].mxu0  ;;  %v3980_v49 = vpop.f32.mrb[10].mxu1 }
 0x133   : > { %v3982_v50 = vpop.f32.mrb[11].mxu1 }
 0x135   : > { %v3984_v51 = vpop.f32.mrb[12].mxu0 }
 0x136   : > { %v3986_v52 = vpop.f32.mrb[13].mxu0  ;;  %v3988_v53 = vpop.f32.mrb[12].mxu1 }
 0x137   : > { %v3990_v55 = vpop.f32.mrb[13].mxu1 }
 0x139   : > { %v3992_v56 = vpop.f32.mrb[14].mxu0 }
 0x13a   : > { %v3994_v57 = vpop.f32.mrb[15].mxu0  ;;  %v3996_v58 = vpop.f32.mrb[14].mxu1 }
 0x13b   : > { %v3998_v59 = vpop.f32.mrb[15].mxu1 }
 0x13d   : > { %v4000_v44 = vpop.f32.mrb[16].mxu0 }
 0x13e   : > { %v4002_v60 = vpop.f32.mrb[17].mxu0  ;;  %v4004_v62 = vpop.f32.mrb[16].mxu1 }
 0x13f   : > { %v4006_v63 = vpop.f32.mrb[17].mxu1 }
 0x141   : > { %v4008_v1 = vpop.f32.mrb[18].mxu0 }
 0x142   : > { %v4010_v2 = vpop.f32.mrb[19].mxu0  ;;  %v4012_v3 = vpop.f32.mrb[18].mxu1 }
 0x143   : > { %v4014_v5 = vpop.f32.mrb[19].mxu1 }
 0x145   : > { %v4016_v6 = vpop.f32.mrb[20].mxu0 }
 0x146   : > { %v4018_v7 = vpop.f32.mrb[21].mxu0  ;;  %v4020_v8 = vpop.f32.mrb[20].mxu1 }
 0x147   : > { %v4022_v26 = vpop.f32.mrb[21].mxu1 }
 0x149   : > { %v4024_v45 = vpop.f32.mrb[22].mxu0 }
 0x14a   : > { %v4026_v61 = vpop.f32.mrb[23].mxu0  ;;  %v4028_v38 = vpop.f32.mrb[22].mxu1 }
 0x14b   : > { %v4030_v9 = vpop.f32.mrb[23].mxu1 }
 0x14d   : > { %v4032_v10 = vpop.f32.mrb[24].mxu0 }
 0x14e   : > { %5228 = vst [vmem:[#allocation8_spill] sm:$0xff] %v4032_v10  ;;  %v4034_v54 = vpop.f32.mrb[25].mxu0  ;;  %v4036_v12 = vpop.f32.mrb[24].mxu1 }
 0x14f   : > { %5229 = vst [vmem:[#allocation9_spill] sm:$0xff] %v4034_v54  ;;  %5230 = vst [vmem:[#allocation10_spill] sm:$0xff] %v4036_v12  ;;  %v4038_v13 = vpop.f32.mrb[25].mxu1 }
 0x150   : > { %5231 = vst [vmem:[#allocation11_spill] sm:$0xff] %v4038_v13 }
 0x151   : > { %v4040_v4 = vpop.f32.mrb[26].mxu0 }
 0x152   : > { %5232 = vst [vmem:[#allocation12_spill] sm:$0xff] %v4040_v4  ;;  %v4042_v14 = vpop.f32.mrb[27].mxu0  ;;  %v4044_v15 = vpop.f32.mrb[26].mxu1 }
 0x153   : > { %5233 = vst [vmem:[#allocation13_spill] sm:$0xff] %v4042_v14  ;;  %5234 = vst [vmem:[#allocation14_spill] sm:$0xff] %v4044_v15  ;;  %v4046_v16 = vpop.f32.mrb[27].mxu1 }
 0x154   : > { %5235 = vst [vmem:[#allocation15_spill] sm:$0xff] %v4046_v16 }
 0x155   : > { %v4048_v17 = vpop.f32.mrb[28].mxu0 }
 0x156   : > { %5236 = vst [vmem:[#allocation16_spill] sm:$0xff] %v4048_v17  ;;  %v4050_v18 = vpop.f32.mrb[29].mxu0  ;;  %v4052_v19 = vpop.f32.mrb[28].mxu1 }
 0x157   : > { %5237 = vst [vmem:[#allocation17_spill] sm:$0xff] %v4050_v18  ;;  %5238 = vst [vmem:[#allocation18_spill] sm:$0xff] %v4052_v19  ;;  %v4054_v46 = vpop.f32.mrb[29].mxu1 }
 0x158   : > { %5239 = vst [vmem:[#allocation19_spill] sm:$0xff] %v4054_v46 }
 0x159   : > { %v4056_v0 = vpop.f32.mrb[30].mxu0 }
 0x15a   : > { %5240 = vst [vmem:[#allocation20_spill] sm:$0xff] %v4056_v0  ;;  %v4058_v20 = vpop.f32.mrb[31].mxu0  ;;  %v4060_v11 = vpop.f32.mrb[30].mxu1 }
 0x15b   : > { %5241 = vst [vmem:[#allocation21_spill] sm:$0xff] %v4058_v20  ;;  %5242 = vst [vmem:[#allocation22_spill] sm:$0xff] %v4060_v11  ;;  %v4062_v21 = vpop.f32.mrb[31].mxu1 }
 0x15c   : > { %5243 = vst [vmem:[#allocation23_spill] sm:$0xff] %v4062_v21 }
 0x15d   : > { %v976_v14 = vpop.f32.mrb[32].mxu0 }
 0x15e   : > { %v1362_v15 = vmul.f32 %v976_v14, %v3936_v22  ;;  %v1089_v16 = vpop.f32.mrb[32].mxu1  ;;  %v978_v4 = vpop.f32.mrb[33].mxu0 }
 0x15f   : > { %v1386_v17 = vmul.f32 %v1089_v16, %v3940_v25  ;;  %v1370_v18 = vmul.f32 %v978_v4, %v3938_v23  ;;  %v1091_v19 = vpop.f32.mrb[33].mxu1 }
 0x160   : > { %v1402_v46 = vmul.f32 %v1091_v19, %v3942_v27 }
 0x161   : > { %v1378_v13 = vadd.f32 %v1370_v18, %v1362_v15  ;;  %v982_v0 = vpop.f32.mrb[34].mxu0 }
 0x162   : > { %v1363_v20 = vmul.f32 %v982_v0, %v3944_v28  ;;  %v1095_v54 = vpop.f32.mrb[34].mxu1  ;;  %v984_v11 = vpop.f32.mrb[35].mxu0 }
 0x163   : > { %v1394_v12 = vadd.f32 %v1386_v17, %v1378_v13  ;;  %v1387_v21 = vmul.f32 %v1095_v54, %v3948_v30  ;;  %v1371_v22 = vmul.f32 %v984_v11, %v3946_v29  ;;  %v1097_v14 = vpop.f32.mrb[35].mxu1 }
 0x164   : > { %v1403_v10 = vmul.f32 %v1097_v14, %v3950_v47 }
 0x165   : > { %v4072_v25 = vadd.f32 %v1402_v46, %v1394_v12  ;;  %v1379_v23 = vadd.f32 %v1371_v22, %v1363_v20  ;;  %v988_v4 = vpop.f32.mrb[36].mxu0 }
 0x166   : > { %v1364_v27 = vmul.f32 %v988_v4, %v3952_v31  ;;  %v1101_v15 = vpop.f32.mrb[36].mxu1  ;;  %v990_v16 = vpop.f32.mrb[37].mxu0 }
 0x167   : > { %v1395_v18 = vadd.f32 %v1387_v21, %v1379_v23  ;;  %v1388_v28 = vmul.f32 %v1101_v15, %v3956_v24  ;;  %v1372_v13 = vmul.f32 %v990_v16, %v3954_v32  ;;  %v1103_v17 = vpop.f32.mrb[37].mxu1 }
 0x168   : > { %v1404_v30 = vmul.f32 %v1103_v17, %v3958_v33 }
 0x169   : > { %v4078_v29 = vadd.f32 %v1403_v10, %v1395_v18  ;;  %v1380_v54 = vadd.f32 %v1372_v13, %v1364_v27  ;;  %v994_v47 = vpop.f32.mrb[38].mxu0 }
 0x16a   : > { %v1365_v12 = vmul.f32 %v994_v47, %v3960_v34  ;;  %v1107_v19 = vpop.f32.mrb[38].mxu1  ;;  %v996_v46 = vpop.f32.mrb[39].mxu0 }
 0x16b   : > { %v1396_v0 = vadd.f32 %v1388_v28, %v1380_v54  ;;  %v1389_v31 = vmul.f32 %v1107_v19, %v3964_v36  ;;  %v1373_v20 = vmul.f32 %v996_v46, %v3962_v35  ;;  %v1109_v11 = vpop.f32.mrb[39].mxu1 }
 0x16c   : > { %v1405_v24 = vmul.f32 %v1109_v11, %v3966_v39 }
 0x16d   : > { %v4084_v32 = vadd.f32 %v1404_v30, %v1396_v0  ;;  %v1381_v21 = vadd.f32 %v1373_v20, %v1365_v12  ;;  %v1000_v33 = vpop.f32.mrb[40].mxu0 }
 0x16e   : > { %v1366_v10 = vmul.f32 %v1000_v33, %v3968_v40  ;;  %v1113_v22 = vpop.f32.mrb[40].mxu1  ;;  %v1002_v14 = vpop.f32.mrb[41].mxu0 }
 0x16f   : > { %v1397_v23 = vadd.f32 %v1389_v31, %v1381_v21  ;;  %v1390_v34 = vmul.f32 %v1113_v22, %v3972_v42  ;;  %v1374_v4 = vmul.f32 %v1002_v14, %v3970_v41  ;;  %v1115_v27 = vpop.f32.mrb[41].mxu1 }
 0x170   : > { %v1406_v36 = vmul.f32 %v1115_v27, %v3974_v43 }
 0x171   : > { %v4090_v35 = vadd.f32 %v1405_v24, %v1397_v23  ;;  %v1382_v15 = vadd.f32 %v1374_v4, %v1366_v10  ;;  %v1006_v39 = vpop.f32.mrb[42].mxu0 }
 0x172   : > { %v1367_v16 = vmul.f32 %v1006_v39, %v3976_v48  ;;  %v1119_v18 = vpop.f32.mrb[42].mxu1  ;;  %v1008_v28 = vpop.f32.mrb[43].mxu0 }
 0x173   : > { %v1398_v13 = vadd.f32 %v1390_v34, %v1382_v15  ;;  %v1391_v40 = vmul.f32 %v1119_v18, %v3980_v49  ;;  %v1375_v17 = vmul.f32 %v1008_v28, %v3978_v37  ;;  %v1121_v30 = vpop.f32.mrb[43].mxu1 }
 0x174   : > { %v1407_v42 = vmul.f32 %v1121_v30, %v3982_v50 }
 0x175   : > { %v4096_v41 = vadd.f32 %v1406_v36, %v1398_v13  ;;  %v1383_v54 = vadd.f32 %v1375_v17, %v1367_v16  ;;  %v1012_v43 = vpop.f32.mrb[44].mxu0 }
 0x176   : > { %v1368_v47 = vmul.f32 %v1012_v43, %v3984_v51  ;;  %v1125_v12 = vpop.f32.mrb[44].mxu1  ;;  %v1014_v19 = vpop.f32.mrb[45].mxu0 }
 0x177   : > { %v1399_v46 = vadd.f32 %v1391_v40, %v1383_v54  ;;  %v1392_v48 = vmul.f32 %v1125_v12, %v3988_v53  ;;  %v1376_v0 = vmul.f32 %v1014_v19, %v3986_v52  ;;  %v1127_v31 = vpop.f32.mrb[45].mxu1 }
 0x178   : > { %v1408_v49 = vmul.f32 %v1127_v31, %v3990_v55 }
 0x179   : > { %v4102_v37 = vadd.f32 %v1407_v42, %v1399_v46  ;;  %v1384_v20 = vadd.f32 %v1376_v0, %v1368_v47  ;;  %v1018_v50 = vpop.f32.mrb[46].mxu0 }
 0x17a   : > { %v1369_v11 = vmul.f32 %v1018_v50, %v3992_v56  ;;  %v1131_v24 = vpop.f32.mrb[46].mxu1  ;;  %v1020_v21 = vpop.f32.mrb[47].mxu0 }
 0x17b   : > { %v1400_v33 = vadd.f32 %v1392_v48, %v1384_v20  ;;  %v1393_v51 = vmul.f32 %v1131_v24, %v3996_v58  ;;  %v1377_v10 = vmul.f32 %v1020_v21, %v3994_v57  ;;  %v1133_v22 = vpop.f32.mrb[47].mxu1 }
 0x17c   : > { %v1409_v53 = vmul.f32 %v1133_v22, %v3998_v59 }
 0x17d   : > { %v4108_v52 = vadd.f32 %v1408_v49, %v1400_v33  ;;  %v1385_v14 = vadd.f32 %v1377_v10, %v1369_v11  ;;  %v1202_v55 = vpop.f32.mrb[48].mxu0 }
 0x17e   : > { %v1418_v23 = vmul.f32 %v1202_v55, %v4000_v44  ;;  %v1315_v34 = vpop.f32.mrb[48].mxu1  ;;  %v1204_v4 = vpop.f32.mrb[49].mxu0 }
 0x17f   : > { %v1401_v27 = vadd.f32 %v1393_v51, %v1385_v14  ;;  %v1450_v56 = vmul.f32 %v1315_v34, %v4004_v62  ;;  %v1434_v36 = vmul.f32 %v1204_v4, %v4002_v60  ;;  %v1317_v15 = vpop.f32.mrb[49].mxu1  ;;  %v5246_v34 = vld [vmem:[#allocation9_spill] sm:$0xff] }
 0x180   : > { %v1426_v58 = vadd.f32 %v1418_v23, %v4072_v25  ;;  %v1466_v57 = vmul.f32 %v1317_v15, %v4006_v63 }
 0x181   : > { %v4115_v39 = vadd.f32 %v1409_v53, %v1401_v27  ;;  %v1208_v59 = vpop.f32.mrb[50].mxu0 }
 0x182   : > { %v1442_v16 = vadd.f32 %v1434_v36, %v1426_v58  ;;  %v1419_v18 = vmul.f32 %v1208_v59, %v4008_v1  ;;  %v1321_v28 = vpop.f32.mrb[50].mxu1  ;;  %v1210_v44 = vpop.f32.mrb[51].mxu0 }
 0x183   : > { %v1451_v13 = vmul.f32 %v1321_v28, %v4012_v3  ;;  %v1435_v40 = vmul.f32 %v1210_v44, %v4010_v2  ;;  %v1323_v62 = vpop.f32.mrb[51].mxu1 }
 0x184   : > { %v1458_v17 = vadd.f32 %v1450_v56, %v1442_v16  ;;  %v1427_v60 = vadd.f32 %v1419_v18, %v4078_v29  ;;  %v1467_v25 = vmul.f32 %v1323_v62, %v4014_v5  ;;  %v5249_v62 = vld [vmem:[#allocation14_spill] sm:$0xff] }
 0x185   : > { %v1214_v30 = vpop.f32.mrb[52].mxu0 }
 0x186   : > { %v4122_v63 = vadd.f32 %v1466_v57, %v1458_v17  ;;  %v1443_v42 = vadd.f32 %v1435_v40, %v1427_v60  ;;  %v1420_v54 = vmul.f32 %v1214_v30, %v4016_v6  ;;  %v1327_v43 = vpop.f32.mrb[52].mxu1  ;;  %v1216_v1 = vpop.f32.mrb[53].mxu0 }
 0x187   : > { %v1452_v47 = vmul.f32 %v1327_v43, %v4020_v8  ;;  %v1436_v3 = vmul.f32 %v1216_v1, %v4018_v7  ;;  %v1329_v12 = vpop.f32.mrb[53].mxu1 }
 0x188   : > { %v1485_v2 = vand.u32 2139095040, %v4122_v63  ;;  %v1459_v19 = vadd.f32 %v1451_v13, %v1443_v42  ;;  %v1428_v29 = vadd.f32 %v1420_v54, %v4084_v32  ;;  %v1468_v5 = vmul.f32 %v1329_v12, %v4022_v26  ;;  %v5248_v13 = vld [vmem:[#allocation12_spill] sm:$0xff] }
 0x189   : > { %v1220_v46 = vpop.f32.mrb[54].mxu0 }
 0x18a   : > { %v1486_v48 = vshrl.u32 %v1485_v2, 23  ;;  %v4130_v0 = vadd.f32 %v1467_v25, %v1459_v19  ;;  %v1444_v31 = vadd.f32 %v1436_v3, %v1428_v29  ;;  %v1421_v6 = vmul.f32 %v1220_v46, %v4024_v45  ;;  %v1333_v49 = vpop.f32.mrb[54].mxu1  ;;  %v1222_v20 = vpop.f32.mrb[55].mxu0  ;;  %v5251_v19 = vld [vmem:[#allocation13_spill] sm:$0xff] }
 0x18b   : > { %v1453_v8 = vmul.f32 %v1333_v49, %v4028_v38  ;;  %v1437_v7 = vmul.f32 %v1222_v20, %v4026_v61  ;;  %v1335_v50 = vpop.f32.mrb[55].mxu1  ;;  %v5244_v38 = vld [vmem:[#allocation8_spill] sm:$0xff]  ;;  %v5245_v61 = vld [vmem:[#allocation10_spill] sm:$0xff] }
 0x18c   : > { %v2580_v11 = vadd.s32 4294967169, %v1486_v48  ;;  %v1589_v24 = vand.u32 2139095040, %v4130_v0  ;;  %v1460_v32 = vadd.f32 %v1452_v47, %v1444_v31  ;;  %v1429_v26 = vadd.f32 %v1421_v6, %v4090_v35  ;;  %v5247_v35 = vld [vmem:[#allocation11_spill] sm:$0xff] }
 0x18d   : > { %v1469_v21 = vmul.f32 %v1335_v50, %v4030_v9  ;;  %v1226_v33 = vpop.f32.mrb[56].mxu0  ;;  %v5188_v50 = vand.u32 2147483647, %v4122_v63 }
 0x18e   : > { %v1492_v51 = vadd.s32 1, %v2580_v11  ;;  %v1590_v10 = vshrl.u32 %v1589_v24, 23  ;;  %v4138_v22 = vadd.f32 %v1468_v5, %v1460_v32  ;;  %v1445_v45 = vadd.f32 %v1437_v7, %v1429_v26  ;;  %v1339_v53 = vpop.f32.mrb[56].mxu1  ;;  %v1228_v14 = vpop.f32.mrb[57].mxu0  ;;  %v5252_v32 = vld [vmem:[#allocation15_spill] sm:$0xff] }
 0x18f   : > { %v1422_v55 = vmul.f32 %v1226_v33, %v5244_v38  ;;  %v1454_v23 = vmul.f32 %v1339_v53, %v5245_v61  ;;  %v1438_v4 = vmul.f32 %v1228_v14, %v5246_v34  ;;  %v1341_v27 = vpop.f32.mrb[57].mxu1  ;;  %v5209_v53 = vmov 920167782  }
 0x190   : > { %v2584_v56 = vadd.s32 4294967169, %v1590_v10  ;;  %v1461_v36 = vadd.f32 %v1453_v8, %v1445_v45  ;;  %vm1493_vm1 = vcmp.gt.s32.totalorder %v1492_v51, 0  ;;  %v1470_v15 = vmul.f32 %v1341_v27, %v5247_v35 }
 0x191   : > { %v1430_v9 = vadd.f32 %v1422_v55, %v4096_v41  ;;  %v1232_v58 = vpop.f32.mrb[58].mxu0  ;;  %v1693_v59 = vand.u32 2139095040, %v4138_v22  ;;  %v1494_v25 = vsel %vm1493_vm1, %v1492_v51, 0  ;;  %v5189_v51 = vand.u32 2147483647, %v4130_v0 }
 0x192   : > { %v1596_v57 = vadd.s32 1, %v2584_v56  ;;  %v1345_v16 = vpop.f32.mrb[58].mxu1  ;;  %v1234_v18 = vpop.f32.mrb[59].mxu0  ;;  %v4146_v28 = vadd.f32 %v1469_v21, %v1461_v36  ;;  %v1423_v40 = vmul.f32 %v1232_v58, %v5248_v13  ;;  %v4152_v3 = vand.u32 31, %v1494_v25  ;;  %v5254_v58 = vld [vmem:[#allocation16_spill] sm:$0xff] }
 0x193   : > { %v1446_v44 = vadd.f32 %v1438_v4, %v1430_v9  ;;  %v1455_v17 = vmul.f32 %v1345_v16, %v5249_v62  ;;  %v1347_v60 = vpop.f32.mrb[59].mxu1  ;;  %v1694_v41 = vshrl.u32 %v1693_v59, 23  ;;  %v1439_v29 = vmul.f32 %v1234_v18, %v5251_v19  ;;  %v5255_v18 = vld [vmem:[#allocation18_spill] sm:$0xff] }
 0x194   : > { %v1797_v54 = vand.u32 2139095040, %v4146_v28  ;;  %v1431_v43 = vadd.f32 %v1423_v40, %v4102_v37  ;;  %vm1597_vm2 = vcmp.gt.s32.totalorder %v1596_v57, 0  ;;  %v4158_v6 = vsub.s32 32, %v4152_v3 }
 0x195   : > { %v1462_v30 = vadd.f32 %v1454_v23, %v1446_v44  ;;  %v1238_v42 = vpop.f32.mrb[60].mxu0  ;;  %v1598_v46 = vsel %vm1597_vm2, %v1596_v57, 0  ;;  %v2588_v48 = vadd.s32 4294967169, %v1694_v41  ;;  %v1471_v26 = vmul.f32 %v1347_v60, %v5252_v32 }
 0x196   : > { %v1351_v1 = vpop.f32.mrb[60].mxu1  ;;  %v1240_v47 = vpop.f32.mrb[61].mxu0  ;;  %v1798_v31 = vshrl.u32 %v1797_v54, 23  ;;  %v1447_v8 = vadd.f32 %v1439_v29, %v1431_v43  ;;  %v4168_v11 = vand.u32 31, %v1598_v46  ;;  %v4174_v45 = vshrl.u32 %v1494_v25, 5  ;;  %v5258_v29 = vld [vmem:[#allocation17_spill] sm:$0xff] }
 0x197   : > { %v1353_v12 = vpop.f32.mrb[61].mxu1  ;;  %v4154_v2 = vadd.f32 %v1470_v15, %v1462_v30  ;;  %v1700_v21 = vadd.s32 1, %v2588_v48  ;;  %v1509_v14 = vshrl.u32 %v5209_v53, %v4158_v6  ;;  %v5198_v38 = vmov 1326507024  }
 0x198   : > { %v2592_v33 = vadd.s32 4294967169, %v1798_v31  ;;  %v1512_v55 = vshrl.u32 %v5198_v38, %v4158_v6  ;;  %v5196_v23 = vmov 2102212464   ;;  %v1511_v4 = vshll.u32 %v5209_v53, %v4152_v3 }
 0x199   : > { %5250 = vst [vmem:[#allocation8_spill] sm:$0xff] %v4154_v2  ;;  %v1244_v5 = vpop.f32.mrb[62].mxu0  ;;  %v1901_v49 = vand.u32 2139095040, %v4154_v2  ;;  %v1508_v34 = vshll.u32 %v5196_v23, %v4152_v3  ;;  %v1463_v27 = vadd.f32 %v1455_v17, %v1447_v8  ;;  %v4186_v56 = vand.u32 8388607, %v5188_v50 }
 0x19a   : > { %v4161_v37 = vpop.f32.mrb[62].mxu1  ;;  %v4163_v20 = vpop.f32.mrb[63].mxu0  ;;  %v4190_v9 = vshrl.u32 %v1598_v46, 5  ;;  %v4193_v35 = vsub.s32 32, %v4168_v11  ;;  %v1424_v57 = vmul.f32 %v1238_v42, %v5254_v58  ;;  %vm1701_vm3 = vcmp.gt.s32.totalorder %v1700_v21, 0 }
 0x19b   : > { %v4165_v7 = vpop.f32.mrb[63].mxu1  ;;  %v1902_v24 = vshrl.u32 %v1901_v49, 23  ;;  %v1804_v59 = vadd.s32 1, %v2592_v33  ;;  %v4196_v16 = vadd.f32 %v1471_v26, %v1463_v27  ;;  %v1456_v44 = vmul.f32 %v1351_v1, %v5255_v18  ;;  %v5259_v49 = vld [vmem:[#allocation19_spill] sm:$0xff] }
 0x19c   : > { %v4201_v40 = vor.u32 %v1509_v14, %v1508_v34  ;;  %v1513_v62 = vor.u32 %v1512_v55, %v1511_v4  ;;  %vm1517_vm4 = vcmp.lt.s32.totalorder %v4174_v45, 4  ;;  %v4206_v17 = vand.u32 8388607, %v5189_v51  ;;  %v5262_v4 = vld [vmem:[#allocation22_spill] sm:$0xff]  ;;  %v5264_v18 = vld [vmem:[#allocation23_spill] sm:$0xff] }
 0x19d   : > { %v2596_v61 = vadd.s32 4294967169, %v1902_v24  ;;  %v1612_v60 = vshll.u32 %v5196_v23, %v4168_v11  ;;  %v1615_v25 = vshll.u32 %v5209_v53, %v4168_v11  ;;  %v2005_v30 = vand.u32 2139095040, %v4196_v16  ;;  %v5260_v24 = vld [vmem:[#allocation20_spill] sm:$0xff] }
 0x19e   : > { %v4172_v10 = vpop.f32.mrb[64].mxu0  ;;  %v1613_v42 = vshrl.u32 %v5209_v53, %v4193_v35  ;;  %vm1621_vm6 = vcmp.lt.s32.totalorder %v4190_v9, 4  ;;  %v1702_v41 = vsel %vm1701_vm3, %v1700_v21, 0  ;;  %v1432_v43 = vadd.f32 %v1424_v57, %v4108_v52  ;;  %v5263_v57 = vld [vmem:[#allocation21_spill] sm:$0xff] }
 0x19f   : > { %v4188_v36 = vpop.f32.mrb[65].mxu0  ;;  %v1908_v15 = vadd.s32 1, %v2596_v61  ;;  %vm1805_vm7 = vcmp.gt.s32.totalorder %v1804_v59, 0  ;;  %v2006_v19 = vshrl.u32 %v2005_v30, 23  ;;  %v1440_v46 = vmul.f32 %v1240_v47, %v5258_v29 }
 0x1a0   : > { %5253 = vst [vmem:[#allocation10_spill] sm:$0xff] %v4188_v36  ;;  %v4226_v48 = vsel %vm1517_vm4, %v4201_v40, 920167782  ;;  %v4230_v31 = vsel %vm1517_vm4, %v1513_v62, 1326507024  ;;  %v1472_v8 = vmul.f32 %v1353_v12, %v5259_v49  ;;  %v1425_v52 = vmul.f32 %v1244_v5, %v5260_v24 }
 0x1a1   : > { %vm1909_vm5 = vcmp.gt.s32.totalorder %v1908_v15, 0  ;;  %v1616_v32 = vshrl.u32 %v5198_v38, %v4193_v35  ;;  %v4236_v26 = vshrl.u32 %v1702_v41, 5  ;;  %v4238_v21 = vand.u32 31, %v1702_v41 }
 0x1a2   : > { %v4199_v13 = vpop.f32.mrb[66].mxu0  ;;  %v4216_v54 = vsel %vm1909_vm5, %v1908_v15, 0  ;;  %v4243_v33 = vor.u32 %v1613_v42, %v1612_v60  ;;  %v1806_v14 = vsel %vm1805_vm7, %v1804_v59, 0  ;;  %v2600_v55 = vadd.s32 4294967169, %v2006_v19 }
 0x1a3   : > { %5256 = vst [vmem:[#allocation9_spill] sm:$0xff] %v4199_v13  ;;  %v4220_v1 = vand.u32 31, %v4216_v54  ;;  %v1448_v61 = vadd.f32 %v1440_v46, %v1432_v43  ;;  %v1433_v34 = vadd.f32 %v1425_v52, %v4115_v39  ;;  %v1457_v27 = vmul.f32 %v4161_v37, %v5262_v4  ;;  %v4273_v41 = vpop.f32.mrb[67].mxu0 }
 0x1a4   : > { %v2012_v15 = vadd.s32 1, %v2600_v55  ;;  %v1441_v59 = vmul.f32 %v4163_v20, %v5263_v57  ;;  %v1473_v62 = vmul.f32 %v4165_v7, %v5264_v18  ;;  %v1617_v60 = vor.u32 %v1616_v32, %v1615_v25  ;;  %5266 = vst [vmem:[#allocation13_spill] sm:$0xff] %v4273_v41 }
 0x1a5   : > { %5257 = vst [vmem:[#allocation11_spill] sm:$0xff] %v4220_v1  ;;  %v4241_v47 = vsub.s32 32, %v4220_v1  ;;  %v4247_v12 = vshll.u32 %v5209_v53, %v4220_v1  ;;  %v1464_v58 = vadd.f32 %v1456_v44, %v1448_v61  ;;  %v4261_v30 = vsub.s32 32, %v4238_v21 }
 0x1a6   : > { %v1716_v42 = vshll.u32 %v5196_v23, %v4238_v21  ;;  %v4269_v37 = vshll.u32 %v5209_v53, %v4238_v21  ;;  %vm2013_vm8 = vcmp.gt.s32.totalorder %v2012_v15, 0  ;;  %v1449_v20 = vadd.f32 %v1441_v59, %v1433_v34 }
 0x1a7   : > { %5261 = vst [vmem:[#allocation12_spill] sm:$0xff] %v4241_v47  ;;  %v4251_v5 = vshrl.u32 %v5198_v38, %v4241_v47  ;;  %v4271_v44 = vadd.f32 %v1472_v8, %v1464_v58  ;;  %v1627_v7 = vsel %vm1621_vm6, %v4243_v33, 920167782  ;;  %v4278_v25 = vand.u32 31, %v1806_v14 }
 0x1a8   : > { %v4280_v43 = vsel %vm2013_vm8, %v2012_v15, 0  ;;  %v5194_v19 = vmov 2475754826   ;;  %v1465_v8 = vadd.f32 %v1457_v27, %v1449_v20  ;;  %v5192_v24 = vmov 683565275  }
 0x1a9   : > { %5265 = vst [vmem:[#allocation14_spill] sm:$0xff] %v4271_v44  ;;  %v1604_v29 = vshrl.u32 %v5194_v19, %v4193_v35  ;;  %v4285_v46 = vand.u32 31, %v4280_v43  ;;  %v2109_v49 = vand.u32 2139095040, %v4271_v44  ;;  %v1603_v52 = vshll.u32 %v5192_v24, %v4168_v11 }
 0x1aa   : > { %v1631_v32 = vsel %vm1621_vm6, %v1617_v60, 1326507024  ;;  %v1717_v55 = vshrl.u32 %v5209_v53, %v4261_v30  ;;  %v1606_v61 = vshll.u32 %v5194_v19, %v4168_v11  ;;  %v5190_v34 = vmov 2131351028  }
 0x1ab   : > { %v1607_v4 = vshrl.u32 %v5190_v34, %v4193_v35  ;;  %v4300_v27 = vshrl.u32 %v5198_v38, %v4261_v30  ;;  %v4303_v15 = vsub.s32 32, %v4285_v46  ;;  %v1605_v58 = vor.u32 %v1604_v29, %v1603_v52 }
 0x1ac   : > { %v1609_v57 = vshll.u32 %v5190_v34, %v4168_v11  ;;  %v2110_v59 = vshrl.u32 %v2109_v49, 23  ;;  %v4307_v18 = vadd.f32 %v1473_v62, %v1465_v8  ;;  %v1610_v20 = vshrl.u32 %v5196_v23, %v4193_v35 }
 0x1ad   : > { %5267 = vst [vmem:[#allocation15_spill] sm:$0xff] %v4303_v15  ;;  %v1608_v60 = vor.u32 %v1607_v4, %v1606_v61  ;;  %v4311_v50 = vshrl.u32 %v1806_v14, 5  ;;  %v4314_v51 = vsub.s32 32, %v4278_v25  ;;  %v4318_v39 = vshll.u32 %v5209_v53, %v4285_v46 }
 0x1ae   : > { %5268 = vst [vmem:[#allocation16_spill] sm:$0xff] %v4307_v18  ;;  %v4322_v29 = vshrl.u32 %v5198_v38, %v4303_v15  ;;  %vm1725_vm9 = vcmp.lt.s32.totalorder %v4236_v26, 4  ;;  %v2604_v11 = vadd.s32 4294967169, %v2110_v59  ;;  %v2213_v62 = vand.u32 2139095040, %v4307_v18 }
 0x1af   : > { %v1611_v49 = vor.u32 %v1610_v20, %v1609_v57  ;;  %vm1618_vm10 = vcmp.lt.s32.totalorder %v4190_v9, 1  ;;  %v1594_v8 = vor.u32 8388608, %v4206_v17  ;;  %vm1620_vm11 = vcmp.lt.s32.totalorder %v4190_v9, 3 }
 0x1b0   : > { %v1626_v52 = vsel %vm1618_vm10, %v1605_v58, %v1608_v60  ;;  %v4333_v61 = vor.u32 %v1717_v55, %v1716_v42  ;;  %v2116_v4 = vadd.s32 1, %v2604_v11  ;;  %v2214_v34 = vshrl.u32 %v2213_v62, 23 }
 0x1b1   : > { %v1628_v59 = vsel %vm1620_vm11, %v1611_v49, %v1627_v7  ;;  %v1821_v57 = vshrl.u32 %v5209_v53, %v4314_v51  ;;  %v1602_v20 = vshrl.u32 %v5192_v24, %v4193_v35  ;;  %vm1619_vm12 = vcmp.lt.s32.totalorder %v4190_v9, 2 }
 0x1b2   : > { %v1623_v17 = vsel %vm1621_vm6, %v1611_v49, 2102212464  ;;  %vm2117_vm13 = vcmp.gt.s32.totalorder %v2116_v4, 0  ;;  %v2608_v14 = vadd.s32 4294967169, %v2214_v34  ;;  %v1629_v42 = vsel %vm1619_vm12, %v1626_v52, %v1628_v59 }
 0x1b3   : > { %v1630_v55 = vsel %vm1618_vm10, %v1608_v60, %v1611_v49  ;;  %v4348_v7 = vsel %vm2117_vm13, %v2116_v4, 0  ;;  %v1622_v11 = vsel %vm1618_vm10, %v1602_v20, %v1605_v58  ;;  %v1632_v35 = vsel %vm1620_vm11, %v4243_v33, %v1631_v32 }
 0x1b4   : > { %v1634_v62 = vshll.u32 %v1594_v8, 8  ;;  %v4356_v24 = vand.u32 31, %v4348_v7  ;;  %v2220_v34 = vadd.s32 1, %v2608_v14  ;;  %v1624_v52 = vsel %vm1620_vm11, %v1608_v60, %v1623_v17 }
 0x1b5   : > { %v1633_v49 = vsel %vm1619_vm12, %v1630_v55, %v1632_v35  ;;  %v1820_v32 = vshll.u32 %v5196_v23, %v4278_v25  ;;  %v4375_v14 = vshll.u32 %v5209_v53, %v4278_v25  ;;  %v4383_v8 = vsel %vm1725_vm9, %v4333_v61, 920167782 }
 0x1b6   : > { %v4362_v4 = vmul.u32.u64.low %v1634_v62, %v1633_v49  ;;  %v4363_v59 = vmul.u32.u64.high %v1634_v62, %v1633_v49, %v4362_v4  ;;  %v4365_v19 = vmul.u32.u64.low %v1634_v62, %v1629_v42  ;;  %v4366_v58 = vmul.u32.u64.high %v1634_v62, %v1629_v42, %v4365_v19 }
 0x1b7   : > { %v4378_v60 = vsub.s32 32, %v4356_v24  ;;  %v4387_v20 = vshrl.u32 %v5198_v38, %v4314_v51  ;;  %vm2221_vm14 = vcmp.gt.s32.totalorder %v2220_v34, 0  ;;  %v1625_v17 = vsel %vm1619_vm12, %v1622_v11, %v1624_v52 }
 0x1b8   : > { %v4393_v42 = vshll.u32 %v5209_v53, %v4356_v24  ;;  %v4399_v35 = vsel %vm2221_vm14, %v2220_v34, 0  ;;  %v5271_v49 = vmov 2475754826   ;;  %v4403_v33 = vor.u32 %v1821_v57, %v1820_v32 }
 0x1b9   : > { %v4397_v55 = vshrl.u32 %v5198_v38, %v4378_v60  ;;  %v1500_v4 = vshrl.u32 %v5271_v49, %v4158_v6  ;;  %v4406_v23 = vshrl.u32 %v4216_v54, 5  ;;  %v4409_v9 = vand.u32 31, %v4399_v35 }
 0x1ba   : > { %5269 = vst [vmem:[#allocation18_spill] sm:$0xff] %v4393_v42  ;;  %vm1643_vm15 = vc.u32 %v4363_v59, %v4365_v19  ;;  %v1925_v11 = vshrl.u32 %v5209_v53, %v4241_v47  ;;  %v1644_v52 = vadd.s32 1, %v4366_v58  ;;  %v5272_v57 = vmov 683565275  }
 0x1bb   : > { %5270 = vst [vmem:[#allocation17_spill] sm:$0xff] %v4397_v55  ;;  %v1499_v32 = vshll.u32 %v5272_v57, %v4152_v3  ;;  %v1825_v54 = vor.u32 %v4387_v20, %v4375_v14  ;;  %v5273_v38 = vmov 2102212464   ;;  %v4425_v41 = vsub.s32 32, %v4409_v9 }
 0x1bc   : > { %v1924_v44 = vshll.u32 %v5273_v38, %v4220_v1  ;;  %v1641_v18 = vmul.u32 %v1634_v62, %v1625_v17  ;;  %v4429_v13 = vshll.u32 %v5209_v53, %v4409_v9  ;;  %v1645_v34 = vsel %vm1643_vm15, %v1644_v52, %v4366_v58  ;;  %v4451_v52 = vpop.f32.mrb[64].mxu1 }
 0x1bd   : > { %v1490_v42 = vor.u32 8388608, %v4186_v56  ;;  %v1501_v55 = vor.u32 %v1500_v4, %v1499_v32  ;;  %vm1829_vm0 = vcmp.lt.s32.totalorder %v4311_v50, 4  ;;  %v5275_v14 = vmov 1326507024   ;;  %5279 = vst [vmem:[#allocation21_spill] sm:$0xff] %v4451_v52 }
 0x1be   : > { %5274 = vst [vmem:[#allocation19_spill] sm:$0xff] %v4429_v13  ;;  %v4436_v20 = vshrl.u32 %v5275_v14, %v4425_v41  ;;  %v1646_v47 = vadd.s32 %v1645_v34, %v1641_v18  ;;  %v1502_v1 = vshll.u32 %v5271_v49, %v4152_v3  ;;  %v5277_v62 = vmov 2131351028  }
 0x1bf   : > { %v1503_v17 = vshrl.u32 %v5277_v62, %v4158_v6  ;;  %v4442_v53 = vor.u32 %v1925_v11, %v1924_v44  ;;  %v4445_v58 = vshrl.u32 %v4280_v43, 5  ;;  %v1505_v56 = vshll.u32 %v5277_v62, %v4152_v3 }
 0x1c0   : > { %5276 = vst [vmem:[#allocation20_spill] sm:$0xff] %v4436_v20  ;;  %v1506_v4 = vshrl.u32 %v5273_v38, %v4158_v6  ;;  %v5280_v18 = vmov 920167782   ;;  %v1647_v14 = vadd.s32 536870912, %v1646_v47  ;;  %v1498_v43 = vshrl.u32 %v5272_v57, %v4158_v6 }
 0x1c1   : > { %5278 = vst [vmem:[#allocation22_spill] sm:$0xff] %v4442_v53  ;;  %v2029_v34 = vshrl.u32 %v5280_v18, %v4303_v15  ;;  %v1504_v44 = vor.u32 %v1503_v17, %v1502_v1  ;;  %vm1514_vm1 = vcmp.lt.s32.totalorder %v4174_v45, 1  ;;  %vm1515_vm2 = vcmp.lt.s32.totalorder %v4174_v45, 2 }
 0x1c2   : > { %v1507_v11 = vor.u32 %v1506_v4, %v1505_v56  ;;  %v1648_v3 = vshrl.u32 %v1647_v14, 30  ;;  %vm1516_vm3 = vcmp.lt.s32.totalorder %v4174_v45, 3  ;;  %v1530_v2 = vshll.u32 %v1490_v42, 8 }
 0x1c3   : > { %v1522_v52 = vsel %vm1514_vm1, %v1501_v55, %v1504_v44  ;;  %v1528_v1 = vsel %vm1516_vm3, %v4201_v40, %v4230_v31  ;;  %v2028_v6 = vshll.u32 %v5273_v38, %v4285_v46  ;;  %v1518_v56 = vsel %vm1514_vm1, %v1498_v43, %v1501_v55 }
 0x1c4   : > { %v1519_v36 = vsel %vm1517_vm4, %v1507_v11, 2102212464  ;;  %v1524_v32 = vsel %vm1516_vm3, %v1507_v11, %v4226_v48  ;;  %v1526_v13 = vsel %vm1514_vm1, %v1504_v44, %v1507_v11  ;;  %v1649_v17 = vshll.u32 %v1648_v3, 30 }
 0x1c5   : > { %v1525_v4 = vsel %vm1515_vm2, %v1522_v52, %v1524_v32  ;;  %v1520_v14 = vsel %vm1516_vm3, %v1504_v44, %v1519_v36  ;;  %v1529_v42 = vsel %vm1515_vm2, %v1526_v13, %v1528_v1  ;;  %v4477_v48 = vor.u32 %v2029_v34, %v2028_v6 }
 0x1c6   : > { %v4473_v20 = vmul.u32.u64.low %v1530_v2, %v1525_v4  ;;  %v4474_v15 = vmul.u32.u64.high %v1530_v2, %v1525_v4, %v4473_v20  ;;  %v4479_v11 = vsub.s32 %v1646_v47, %v1649_v17  ;;  %v5281_v55 = vor.u32 %v4300_v27, %v4269_v37 }
 0x1c7   : > { %v4481_v40 = vmul.u32.u64.low %v1530_v2, %v1529_v42  ;;  %v4482_v31 = vmul.u32.u64.high %v1530_v2, %v1529_v42, %v4481_v40  ;;  %v1835_v13 = vsel %vm1829_vm0, %v4403_v33, 920167782  ;;  %vm1933_vm4 = vcmp.lt.s32.totalorder %v4406_v23, 4 }
 0x1c8   : > { %v4489_v36 = vsel %vm1725_vm9, %v5281_v55, 1326507024  ;;  %vm1588_vm5 = vcmp.lt.s32.totalorder %v4130_v0, 0  ;;  %v1839_v47 = vsel %vm1829_vm0, %v1825_v54, 1326507024  ;;  %v1652_v52 = vsub.s32 0, %v4479_v11 }
 0x1c9   : > { %v1521_v37 = vsel %vm1515_vm2, %v1518_v56, %v1520_v14  ;;  %v5217_v27 = vand.u32 2147483647, %v4146_v28  ;;  %v4505_v34 = vsel %vm1933_vm4, %v4442_v53, 920167782  ;;  %v5282_v32 = vor.u32 %v4251_v5, %v4247_v12 }
 0x1ca   : > { %vm2037_vm6 = vcmp.lt.s32.totalorder %v4445_v58, 4  ;;  %v1540_v54 = vadd.s32 1, %v4474_v15  ;;  %v2585_v43 = vmin.u32 %v1652_v52, %v4479_v11  ;;  %vm1539_vm7 = vc.u32 %v4482_v31, %v4473_v20 }
 0x1cb   : > { %v4512_v44 = vsel %vm1933_vm4, %v5282_v32, 1326507024  ;;  %v4519_v45 = vsel %vm2037_vm6, %v4477_v48, 920167782  ;;  %v1812_v12 = vshrl.u32 %v5271_v49, %v4314_v51  ;;  %v5283_v5 = vor.u32 %v4322_v29, %v4318_v39 }
 0x1cc   : > { %v1672_v6 = vsub.s32 4, %v1648_v3  ;;  %v1537_v17 = vmul.u32 %v1530_v2, %v1521_v37  ;;  %v1541_v56 = vsel %vm1539_vm7, %v1540_v54, %v4474_v15  ;;  %v1654_v4 = vclz %v2585_v43 }
 0x1cd   : > { %v4531_v1 = vsel %vm2037_vm6, %v5283_v5, 1326507024  ;;  %v1801_v14 = vand.u32 8388607, %v5217_v27  ;;  %v1811_v42 = vshll.u32 %v5272_v57, %v4278_v25  ;;  %v1814_v40 = vshll.u32 %v5271_v49, %v4278_v25 }
 0x1ce   : > { %v5284_v39 = vand.u32 2147483647, %v4130_v0  ;;  %v1542_v55 = vadd.s32 %v1541_v56, %v1537_v17  ;;  %v1815_v2 = vshrl.u32 %v5277_v62, %v4314_v51  ;;  %v1817_v15 = vshll.u32 %v5277_v62, %v4278_v25 }
 0x1cf   : > { %v1818_v52 = vshrl.u32 %v5273_v38, %v4314_v51  ;;  %v4553_v37 = vshrl.u32 %v4348_v7, 5  ;;  %v4557_v32 = vshll.u32 %v5273_v38, %v4356_v24  ;;  %v2586_v54 = vadd.s32 4294967294, %v1654_v4 }
 0x1d0   : > { %vm4542_vm8 = vcmp.le.f32.partialorder %v5284_v39, 0.7853982  ;;  %v1813_v43 = vor.u32 %v1812_v12, %v1811_v42  ;;  %v1642_v5 = vadd.s32 %v4365_v19, %v4363_v59  ;;  %v1543_v17 = vadd.s32 536870912, %v1542_v55  ;;  %v4567_v12 = vpop.f32.mrb[65].mxu1 }
 0x1d1   : > { %5287 = vst [vmem:[#allocation23_spill] sm:$0xff] %v4553_v37  ;;  %v1816_v56 = vor.u32 %v1815_v2, %v1814_v40  ;;  %v1819_v39 = vor.u32 %v1818_v52, %v1817_v15  ;;  %vm2587_vm10 = vcmp.lt.s32.totalorder %v2586_v54, 0  ;;  %v1673_v25 = vsel %vm1588_vm5, %v1672_v6, %v1648_v3  ;;  %5288 = vst [vmem:[#allocation24_spill] sm:$0xff] %v4567_v12 }
 0x1d2   : > { %v1802_v27 = vor.u32 8388608, %v1801_v14  ;;  %v1810_v7 = vshrl.u32 %v5272_v57, %v4314_v51  ;;  %v1657_v37 = vsel %vm2587_vm10, 0, %v2586_v54  ;;  %v1544_v53 = vshrl.u32 %v1543_v17, 30 }
 0x1d3   : > { %vm1826_vm11 = vcmp.lt.s32.totalorder %v4311_v50, 1  ;;  %vm1828_vm12 = vcmp.lt.s32.totalorder %v4311_v50, 3  ;;  %v1658_v19 = vsub.s32 32, %v1657_v37  ;;  %v1662_v59 = vsub.s32 4294967266, %v1657_v37 }
 0x1d4   : > { %v1834_v4 = vsel %vm1826_vm11, %v1813_v43, %v1816_v56  ;;  %v1840_v3 = vsel %vm1828_vm12, %v4403_v33, %v1839_v47  ;;  %vm1484_vm13 = vcmp.lt.s32.totalorder %v4122_v63, 0  ;;  %v1545_v51 = vshll.u32 %v1544_v53, 30 }
 0x1d5   : > { %vm1827_vm14 = vcmp.lt.s32.totalorder %v4311_v50, 2  ;;  %v1831_v6 = vsel %vm1829_vm0, %v1819_v39, 2102212464  ;;  %v1836_v14 = vsel %vm1828_vm12, %v1819_v39, %v1835_v13  ;;  %v1659_v42 = vshll.u32 %v4479_v11, %v1657_v37 }
 0x1d6   : > { %v1660_v40 = vshrl.u32 %v1642_v5, %v1658_v19  ;;  %v1663_v2 = vadd.s32 127, %v1662_v59  ;;  %v1838_v15 = vsel %vm1826_vm11, %v1816_v56, %v1819_v39  ;;  %v4583_v52 = vsub.s32 %v1542_v55, %v1545_v51 }
 0x1d7   : > { %v1837_v33 = vsel %vm1827_vm14, %v1834_v4, %v1836_v14  ;;  %v1841_v47 = vsel %vm1827_vm14, %v1838_v15, %v1840_v3  ;;  %v1842_v54 = vshll.u32 %v1802_v27, 8  ;;  %v1675_v13 = vsel %vm4542_vm8, 0, %v1673_v25 }
 0x1d8   : > { %v1661_v17 = vor.u32 %v1660_v40, %v1659_v42  ;;  %v1664_v12 = vshll.u32 %v1663_v2, 23  ;;  %v1830_v11 = vsel %vm1826_vm11, %v1810_v7, %v1813_v43  ;;  %v1548_v37 = vsub.s32 0, %v4583_v52 }
 0x1d9   : > { %v1832_v55 = vsel %vm1828_vm12, %v1816_v56, %v1831_v6  ;;  %v4596_v5 = vmul.u32.u64.low %v1842_v54, %v1841_v47  ;;  %v4597_v39 = vmul.u32.u64.high %v1842_v54, %v1841_v47, %v4596_v5  ;;  %v1568_v59 = vsub.s32 4, %v1544_v53 }
 0x1da   : > { %v1665_v19 = vor.u32 4788187, %v1664_v12  ;;  %v4599_v4 = vmul.u32.u64.low %v1842_v54, %v1837_v33  ;;  %v4600_v27 = vmul.u32.u64.high %v1842_v54, %v1837_v33, %v4599_v4  ;;  %v4605_v25 = vshrl.u32 %v5280_v18, %v4378_v60 }
 0x1db   : > { %v4608_v43 = vshrl.u32 %v4399_v35, 5  ;;  %v5289_v7 = vand.u32 2147483647, %v4122_v63  ;;  %v2581_v12 = vmin.u32 %v1548_v37, %v4583_v52  ;;  %v1690_v3 = vand.u32 2147483647, %v4138_v22 }
 0x1dc   : > { %v4620_v51 = vshll.u32 %v5273_v38, %v4409_v9  ;;  %v1666_v6 = vand.u32 2147483647, %v1665_v19  ;;  %v1668_v14 = vcvt.s32.f32 %v1661_v17  ;;  %v1833_v35 = vsel %vm1827_vm14, %v1830_v11, %v1832_v55 }
 0x1dd   : > { %vm4612_vm15 = vcmp.le.f32.partialorder %v5289_v7, 0.7853982  ;;  %v4626_v42 = vshrl.u32 %v5280_v18, %v4425_v41  ;;  %v1679_v40 = vadd.s32 3, %v1675_v13  ;;  %v1538_v2 = vadd.s32 %v4473_v20, %v4482_v31 }
 0x1de   : > { %v1550_v15 = vclz %v2581_v12  ;;  %v1669_v33 = vmul.f32 %v1668_v14, %v1666_v6  ;;  %v1569_v47 = vsel %vm1484_vm13, %v1568_v59, %v1544_v53  ;;  %vm1851_vm0 = vc.u32 %v4597_v39, %v4599_v4 }
 0x1df   : > { %v1852_v17 = vadd.s32 1, %v4600_v27  ;;  %v1849_v11 = vmul.u32 %v1842_v54, %v1833_v35  ;;  %v1697_v18 = vand.u32 8388607, %v1690_v3  ;;  %v1708_v13 = vshrl.u32 %v5271_v49, %v4261_v30 }
 0x1e0   : > { %v2582_v50 = vadd.s32 4294967294, %v1550_v15  ;;  %v1670_v37 = vxor.u32 2147483648, %v1669_v33  ;;  %v1707_v31 = vshll.u32 %v5272_v57, %v4238_v21  ;;  %v1711_v53 = vshrl.u32 %v5277_v62, %v4261_v30 }
 0x1e1   : > { %v1853_v20 = vsel %vm1851_vm0, %v1852_v17, %v4600_v27  ;;  %v1710_v54 = vshll.u32 %v5271_v49, %v4238_v21  ;;  %v1714_v5 = vshrl.u32 %v5273_v38, %v4261_v30  ;;  %v1713_v27 = vshll.u32 %v5277_v62, %v4238_v21 }
 0x1e2   : > { %vm2583_vm1 = vcmp.lt.s32.totalorder %v2582_v50, 0  ;;  %v1854_v55 = vadd.s32 %v1853_v20, %v1849_v11  ;;  %v1671_v19 = vsel %vm1588_vm5, %v1670_v37, %v1669_v33  ;;  %v1709_v7 = vor.u32 %v1708_v13, %v1707_v31 }
 0x1e3   : > { %v1553_v59 = vsel %vm2583_vm1, 0, %v2582_v50  ;;  %v1674_v12 = vsel %vm4542_vm8, %v4130_v0, %v1671_v19  ;;  %v1712_v35 = vor.u32 %v1711_v53, %v1710_v54  ;;  %v1571_v15 = vsel %vm4612_vm15, 0, %v1569_v47  ;;  %v4665_v53 = vpop.f32.mrb[66].mxu1 }
 0x1e4   : > { %v1554_v6 = vsub.s32 32, %v1553_v59  ;;  %v1558_v14 = vsub.s32 4294967266, %v1553_v59  ;;  %3020 = vcosq.f32 %v1674_v12  ;;  %v1855_v17 = vadd.s32 536870912, %v1854_v55 }
 0x1e5   : > { %v1715_v11 = vor.u32 %v1714_v5, %v1713_v27  ;;  %3022 = vsinq.f32 %v1674_v12  ;;  %v1555_v33 = vshll.u32 %v4583_v52, %v1553_v59  ;;  %v1698_v21 = vor.u32 8388608, %v1697_v18 }
 0x1e6   : > { %v1556_v50 = vshrl.u32 %v1538_v2, %v1554_v6  ;;  %v1559_v13 = vadd.s32 127, %v1558_v14  ;;  %v1856_v37 = vshrl.u32 %v1855_v17, 30  ;;  %vm1722_vm2 = vcmp.lt.s32.totalorder %v4236_v26, 1 }
 0x1e7   : > { %vm1724_vm3 = vcmp.lt.s32.totalorder %v4236_v26, 3  ;;  %v1730_v31 = vsel %vm1722_vm2, %v1709_v7, %v1712_v35  ;;  %v1680_v52 = vand.u32 3, %v1679_v40  ;;  %v1575_v2 = vadd.s32 3, %v1571_v15 }
 0x1e8   : > { %v1557_v29 = vor.u32 %v1556_v50, %v1555_v33  ;;  %v1560_v20 = vshll.u32 %v1559_v13, 23  ;;  %v1732_v47 = vsel %vm1724_vm3, %v1715_v11, %v4383_v8  ;;  %vm1796_vm5 = vcmp.lt.s32.totalorder %v4146_v28, 0 }
 0x1e9   : > { %v1857_v18 = vshll.u32 %v1856_v37, 30  ;;  %vm1723_vm7 = vcmp.lt.s32.totalorder %v4236_v26, 2  ;;  %v1734_v5 = vsel %vm1722_vm2, %v1712_v35, %v1715_v11  ;;  %v1736_v19 = vsel %vm1724_vm3, %v4333_v61, %v4489_v36 }
 0x1ea   : > { %v1561_v54 = vor.u32 4788187, %v1560_v20  ;;  %v1733_v8 = vsel %vm1723_vm7, %v1730_v31, %v1732_v47  ;;  %v1737_v40 = vsel %vm1723_vm7, %v1734_v5, %v1736_v19  ;;  %v1738_v27 = vshll.u32 %v1698_v21, 8 }
 0x1eb   : > { %v4675_v59 = vsub.s32 %v1854_v55, %v1857_v18  ;;  %vm1678_vm8 = vweird.f32 %v4130_v0  ;;  %v1564_v6 = vcvt.s32.f32 %v1557_v29  ;;  %v1706_v14 = vshrl.u32 %v5272_v57, %v4261_v30 }
 0x1ec   : > { %v1562_v12 = vand.u32 2147483647, %v1561_v54  ;;  %v1727_v15 = vsel %vm1725_vm9, %v1715_v11, 2102212464  ;;  %v1880_v36 = vsub.s32 4, %v1856_v37  ;;  %vm1681_vm9 = vcmp.lt.s32.totalorder %v1680_v52, 2 }
 0x1ed   : > { %v1860_v61 = vsub.s32 0, %v4675_v59  ;;  %v4687_v55 = vmul.u32.u64.low %v1738_v27, %v1737_v40  ;;  %v4688_v17 = vmul.u32.u64.high %v1738_v27, %v1737_v40, %v4687_v55  ;;  %v5292_v50 = vand.u32 2147483647, %v4146_v28 }
 0x1ee   : > { %v1565_v33 = vmul.f32 %v1564_v6, %v1562_v12  ;;  %v4696_v21 = vmul.u32.u64.low %v1738_v27, %v1733_v8  ;;  %v4697_v29 = vmul.u32.u64.high %v1738_v27, %v1733_v8, %v4696_v21  ;;  %v3021_v30 = vpop.eup %3020  ;;  %v1726_v20 = vsel %vm1722_vm2, %v1706_v14, %v1709_v7 }
 0x1ef   : > { %vm4692_vm10 = vcmp.le.f32.partialorder %v5292_v50, 0.7853982  ;;  %v2593_v11 = vmin.u32 %v1860_v61, %v4675_v59  ;;  %v1728_v31 = vsel %vm1724_vm3, %v1712_v35, %v1727_v15  ;;  %v3023_v47 = vpop.eup %3022  ;;  %vm1682_vm11 = vcmp.eq.s32.totalorder %v1680_v52, 0 }
 0x1f0   : > { %vm1685_vm12 = vcmp.eq.s32.totalorder %v1680_v52, 2  ;;  %v1686_v18 = vxor.u32 2147483648, %v3021_v30  ;;  %v1566_v54 = vxor.u32 2147483648, %v1565_v33  ;;  %v1683_v5 = vxor.u32 2147483648, %v3023_v47 }
 0x1f1   : > { %v4706_v19 = vand.u32 3, %v1575_v2  ;;  %v1862_v8 = vclz %v2593_v11  ;;  %v1881_v40 = vsel %vm1796_vm5, %v1880_v36, %v1856_v37  ;;  %v1850_v35 = vadd.s32 %v4599_v4, %v4597_v39  ;;  %v5295_v11 = vld [vmem:[#allocation15_spill] sm:$0xff] }
 0x1f2   : > { %v1687_v12 = vsel %vm1685_vm12, %v1686_v18, %v3023_v47  ;;  %v1567_v7 = vsel %vm1484_vm13, %v1566_v54, %v1565_v33  ;;  %v1729_v6 = vsel %vm1723_vm7, %v1726_v20, %v1728_v31  ;;  %v1684_v14 = vsel %vm1682_vm11, %v3021_v30, %v1683_v5 }
 0x1f3   : > { %v1570_v2 = vsel %vm4612_vm15, %v4122_v63, %v1567_v7  ;;  %v2594_v15 = vadd.s32 4294967294, %v1862_v8  ;;  %vm1747_vm14 = vc.u32 %v4688_v17, %v4696_v21  ;;  %v1688_v37 = vsel %vm1681_vm9, %v1684_v14, %v1687_v12 }
 0x1f4   : > { %3024 = vcosq.f32 %v1570_v2  ;;  %v1883_v39 = vsel %vm4692_vm10, 0, %v1881_v40  ;;  %v1748_v26 = vadd.s32 1, %v4697_v29  ;;  %v1689_v4 = vsel %vm1678_vm8, nan, %v1688_v37 }
 0x1f5   : > { %3026 = vsinq.f32 %v1570_v2  ;;  %vm2595_vm13 = vcmp.lt.s32.totalorder %v2594_v15, 0  ;;  %v1745_v56 = vmul.u32 %v1738_v27, %v1729_v6  ;;  %v2436_v61 = vadd.f32 %v4172_v10, %v1689_v4 }
 0x1f6   : > { %v1865_v36 = vsel %vm2595_vm13, 0, %v2594_v15  ;;  %v1749_v55 = vsel %vm1747_vm14, %v1748_v26, %v4697_v29  ;;  %v2002_v52 = vand.u32 2147483647, %v4196_v16  ;;  %v2020_v20 = vshrl.u32 %v5271_v49, %v5295_v11 }
 0x1f7   : > { %v1866_v33 = vsub.s32 32, %v1865_v36  ;;  %v1870_v50 = vsub.s32 4294967266, %v1865_v36  ;;  %v1750_v30 = vadd.s32 %v1749_v55, %v1745_v56  ;;  %2444 = vst [vmem:[%s4734_s7 + $0x8] sm:$0xff] %v2436_v61  ;;  %v1867_v0 = vshll.u32 %v4675_v59, %v1865_v36 }
 0x1f8   : > { %v2022_v10 = vshll.u32 %v5271_v49, %v4285_v46  ;;  %v2023_v27 = vshrl.u32 %v5277_v62, %v5295_v11  ;;  %v2025_v29 = vshll.u32 %v5277_v62, %v4285_v46  ;;  %v2026_v54 = vshrl.u32 %v5273_v38, %v5295_v11 }
 0x1f9   : > { %v1868_v31 = vshrl.u32 %v1850_v35, %v1866_v33  ;;  %v1871_v47 = vadd.s32 127, %v1870_v50  ;;  %v1751_v18 = vadd.s32 536870912, %v1750_v30  ;;  %vm1577_vm15 = vcmp.lt.s32.totalorder %v4706_v19, 2 }
 0x1fa   : > { %v2009_v59 = vand.u32 8388607, %v2002_v52  ;;  %v2019_v5 = vshll.u32 %v5272_v57, %v4285_v46  ;;  %v2024_v8 = vor.u32 %v2023_v27, %v2022_v10  ;;  %vm2036_vm0 = vcmp.lt.s32.totalorder %v4445_v58, 3  ;;  %v4759_v46 = vpop.f32.mrb[67].mxu1 }
 0x1fb   : > { %vm1574_vm1 = vweird.f32 %v4122_v63  ;;  %v1869_v40 = vor.u32 %v1868_v31, %v1867_v0  ;;  %v1872_v12 = vshll.u32 %v1871_v47, 23  ;;  %v1752_v7 = vshrl.u32 %v1751_v18, 30 }
 0x1fc   : > { %v2027_v35 = vor.u32 %v2026_v54, %v2025_v29  ;;  %vm1578_vm2 = vcmp.eq.s32.totalorder %v4706_v19, 0  ;;  %vm1581_vm3 = vcmp.eq.s32.totalorder %v4706_v19, 2  ;;  %v2021_v6 = vor.u32 %v2020_v20, %v2019_v5 }
 0x1fd   : > { %v2048_v14 = vsel %vm2036_vm0, %v4477_v48, %v4531_v1  ;;  %v1873_v2 = vor.u32 4788187, %v1872_v12  ;;  %v1887_v15 = vadd.s32 3, %v1883_v39  ;;  %v1753_v37 = vshll.u32 %v1752_v7, 30 }
 0x1fe   : > { %v2018_v26 = vshrl.u32 %v5272_v57, %v5295_v11  ;;  %v3025_v4 = vpop.eup %3024  ;;  %v1876_v56 = vcvt.s32.f32 %v1869_v40  ;;  %v2010_v61 = vor.u32 8388608, %v2009_v59  ;;  %vm2034_vm7 = vcmp.lt.s32.totalorder %v4445_v58, 1 }
 0x1ff   : > { %vm2035_vm8 = vcmp.lt.s32.totalorder %v4445_v58, 2  ;;  %v3027_v36 = vpop.eup %3026  ;;  %v1582_v55 = vxor.u32 2147483648, %v3025_v4  ;;  %v1874_v33 = vand.u32 2147483647, %v1873_v2  ;;  %v4765_v50 = vsub.s32 %v1750_v30, %v1753_v37 }
 0x200   : > { %v2046_v48 = vsel %vm2034_vm7, %v2024_v8, %v2027_v35  ;;  %v1579_v1 = vxor.u32 2147483648, %v3027_v36  ;;  %v2038_v20 = vsel %vm2034_vm7, %v2018_v26, %v2021_v6  ;;  %v2039_v39 = vsel %vm2037_vm6, %v2027_v35, 2102212464 }
 0x201   : > { %v2042_v0 = vsel %vm2034_vm7, %v2021_v6, %v2024_v8  ;;  %v1583_v11 = vsel %vm1581_vm3, %v1582_v55, %v3027_v36  ;;  %v1877_v10 = vmul.f32 %v1876_v56, %v1874_v33  ;;  %v1756_v27 = vsub.s32 0, %v4765_v50 }
 0x202   : > { %v2044_v29 = vsel %vm2036_vm0, %v2027_v35, %v4519_v45  ;;  %v1580_v30 = vsel %vm1578_vm2, %v3025_v4, %v1579_v1  ;;  %v1776_v31 = vsub.s32 4, %v1752_v7  ;;  %v2049_v47 = vsel %vm2035_vm8, %v2046_v48, %v2048_v14  ;;  %v5296_v14 = vld [vmem:[#allocation10_spill] sm:$0xff] }
 0x203   : > { %v2050_v18 = vshll.u32 %v2010_v61, 8  ;;  %v1584_v54 = vsel %vm1577_vm15, %v1580_v30, %v1583_v11  ;;  %v1878_v59 = vxor.u32 2147483648, %v1877_v10  ;;  %v2589_v5 = vmin.u32 %v1756_v27, %v4765_v50 }
 0x204   : > { %v2040_v40 = vsel %vm2036_vm0, %v2024_v8, %v2039_v39  ;;  %v1585_v45 = vsel %vm1574_vm1, nan, %v1584_v54  ;;  %v2045_v12 = vsel %vm2035_vm8, %v2042_v0, %v2044_v29  ;;  %v4793_v19 = vor.u32 %v4626_v42, %v4620_v51  ;;  %v5299_v42 = vld [vmem:[#allocation8_spill] sm:$0xff] }
 0x205   : > { %v4788_v35 = vmul.u32.u64.low %v2050_v18, %v2049_v47  ;;  %v4789_v6 = vmul.u32.u64.high %v2050_v18, %v2049_v47, %v4788_v35  ;;  %v2435_v2 = vadd.f32 %v5296_v14, %v1585_v45  ;;  %v1879_v37 = vsel %vm1796_vm5, %v1878_v59, %v1877_v10  ;;  %v5301_v39 = vld [vmem:[#allocation12_spill] sm:$0xff] }
 0x206   : > { %v1758_v26 = vclz %v2589_v5  ;;  %v1882_v63 = vsel %vm4692_vm10, %v4146_v28, %v1879_v37  ;;  %vm4803_vm6 = vcmp.le.f32.partialorder %v1690_v3, 0.7853982  ;;  %vm1692_vm9 = vcmp.lt.s32.totalorder %v4138_v22, 0 }
 0x207   : > { %v2041_v51 = vsel %vm2035_vm8, %v2038_v20, %v2040_v40  ;;  %v1898_v4 = vand.u32 2147483647, %v5299_v42  ;;  %2443 = vst [vmem:[%s4734_s7] sm:$0xff] %v2435_v2  ;;  %3028 = vcosq.f32 %v1882_v63  ;;  %v1888_v13 = vand.u32 3, %v1887_v15  ;;  %v5300_v20 = vld [vmem:[#allocation11_spill] sm:$0xff] }
 0x208   : > { %v2590_v56 = vadd.s32 4294967294, %v1758_v26  ;;  %v4812_v61 = vmul.u32.u64.low %v2050_v18, %v2045_v12  ;;  %v4813_v36 = vmul.u32.u64.high %v2050_v18, %v2045_v12, %v4812_v61  ;;  %3030 = vsinq.f32 %v1882_v63 }
 0x209   : > { %v1746_v3 = vadd.s32 %v4696_v21, %v4688_v17  ;;  %v4819_v55 = vsel %vm1692_vm9, %v1776_v31, %v1752_v7  ;;  %v2057_v58 = vmul.u32 %v2050_v18, %v2041_v51  ;;  %v1905_v1 = vand.u32 8388607, %v1898_v4 }
 0x20a   : > { %vm2591_vm5 = vcmp.lt.s32.totalorder %v2590_v56, 0  ;;  %v4822_v33 = vadd.s32 %v4812_v61, %v4789_v6  ;;  %vm2059_vm10 = vc.u32 %v4789_v6, %v4812_v61  ;;  %v1915_v15 = vshll.u32 %v5272_v57, %v5300_v20 }
 0x20b   : > { %v1761_v48 = vsel %vm2591_vm5, 0, %v2590_v56  ;;  %v1916_v17 = vshrl.u32 %v5271_v49, %v5301_v39  ;;  %v2060_v0 = vadd.s32 1, %v4813_v36  ;;  %v1918_v11 = vshll.u32 %v5271_v49, %v5300_v20 }
 0x20c   : > { %v1762_v21 = vsub.s32 32, %v1761_v48  ;;  %v1766_v7 = vsub.s32 4294967266, %v1761_v48  ;;  %vm1890_vm11 = vcmp.eq.s32.totalorder %v1888_v13, 0  ;;  %v1763_v10 = vshll.u32 %v4765_v50, %v1761_v48  ;;  %v5302_v48 = vld [vmem:[#allocation22_spill] sm:$0xff] }
 0x20d   : > { %v1919_v27 = vshrl.u32 %v5277_v62, %v5301_v39  ;;  %v1921_v29 = vshll.u32 %v5277_v62, %v5300_v20  ;;  %v1922_v30 = vshrl.u32 %v5273_v38, %v5301_v39  ;;  %vm1889_vm12 = vcmp.lt.s32.totalorder %v1888_v13, 2 }
 0x20e   : > { %v1764_v31 = vshrl.u32 %v1746_v3, %v1762_v21  ;;  %v1767_v47 = vadd.s32 127, %v1766_v7  ;;  %v2061_v18 = vsel %vm2059_vm10, %v2060_v0, %v4813_v36  ;;  %v1917_v54 = vor.u32 %v1916_v17, %v1915_v15 }
 0x20f   : > { %vm1893_vm14 = vcmp.eq.s32.totalorder %v1888_v13, 2  ;;  %v2062_v59 = vadd.s32 %v2061_v18, %v2057_v58  ;;  %v1920_v50 = vor.u32 %v1919_v27, %v1918_v11  ;;  %v1923_v5 = vor.u32 %v1922_v30, %v1921_v29 }
 0x210   : > { %v1765_v40 = vor.u32 %v1764_v31, %v1763_v10  ;;  %v1768_v45 = vshll.u32 %v1767_v47, 23  ;;  %v1779_v12 = vsel %vm4803_vm6, 0, %v4819_v55  ;;  %v1906_v35 = vor.u32 8388608, %v1905_v1 }
 0x211   : > { %v2063_v14 = vadd.s32 536870912, %v2062_v59  ;;  %v1914_v2 = vshrl.u32 %v5272_v57, %v5301_v39  ;;  %vm1930_vm13 = vcmp.lt.s32.totalorder %v4406_v23, 1  ;;  %vm1932_vm15 = vcmp.lt.s32.totalorder %v4406_v23, 3  ;;  %v3029_v6 = vpop.eup %3028 }
 0x212   : > { %v1769_v37 = vor.u32 4788187, %v1768_v45  ;;  %vm1931_vm0 = vcmp.lt.s32.totalorder %v4406_v23, 2  ;;  %v1938_v26 = vsel %vm1930_vm13, %v1917_v54, %v1920_v50  ;;  %v1940_v63 = vsel %vm1932_vm15, %v1923_v5, %v4505_v34  ;;  %v3031_v51 = vpop.eup %3030 }
 0x213   : > { %v1894_v56 = vxor.u32 2147483648, %v3029_v6  ;;  %v1772_v61 = vcvt.s32.f32 %v1765_v40  ;;  %v4857_v36 = vshrl.u32 %v2063_v14, 30  ;;  %v1942_v3 = vsel %vm1930_vm13, %v1920_v50, %v1923_v5  ;;  %v5304_v14 = vld [vmem:[#allocation16_spill] sm:$0xff] }
 0x214   : > { %v1891_v55 = vxor.u32 2147483648, %v3031_v51  ;;  %v1770_v58 = vand.u32 2147483647, %v1769_v37  ;;  %v1944_v1 = vsel %vm1932_vm15, %v5302_v48, %v4512_v44  ;;  %v1946_v20 = vshll.u32 %v1906_v35, 8  ;;  %v5306_v37 = vld [vmem:[#allocation19_spill] sm:$0xff] }
 0x215   : > { %v1895_v15 = vsel %vm1893_vm14, %v1894_v56, %v3031_v51  ;;  %v2065_v34 = vshll.u32 %v4857_v36, 30  ;;  %v1935_v39 = vsel %vm1933_vm4, %v1923_v5, 2102212464  ;;  %v1945_v17 = vsel %vm1931_vm0, %v1942_v3, %v1944_v1 }
 0x216   : > { %v1892_v21 = vsel %vm1890_vm11, %v3029_v6, %v1891_v55  ;;  %v1773_v7 = vmul.f32 %v1772_v61, %v1770_v58  ;;  %v4872_v0 = vmul.u32.u64.low %v1946_v20, %v1945_v17  ;;  %v4873_v11 = vmul.u32.u64.high %v1946_v20, %v1945_v17, %v4872_v0  ;;  %v5305_v6 = vld [vmem:[#allocation20_spill] sm:$0xff] }
 0x217   : > { %vm1886_vm1 = vweird.f32 %v4146_v28  ;;  %v1896_v44 = vsel %vm1889_vm12, %v1892_v21, %v1895_v15  ;;  %v4877_v10 = vsub.s32 %v2062_v59, %v2065_v34  ;;  %v1941_v27 = vsel %vm1931_vm0, %v1938_v26, %v1940_v63  ;;  %v5303_v28 = vld [vmem:[#allocation9_spill] sm:$0xff] }
 0x218   : > { %v1897_v29 = vsel %vm1886_vm1, nan, %v1896_v44  ;;  %v1774_v30 = vxor.u32 2147483648, %v1773_v7  ;;  %v1934_v31 = vsel %vm1930_vm13, %v1914_v2, %v1917_v54  ;;  %v1936_v47 = vsel %vm1932_vm15, %v1920_v50, %v1935_v39 }
 0x219   : > { %v4887_v18 = vor.u32 %v4605_v25, %v4557_v32  ;;  %v2438_v13 = vadd.f32 %v5303_v28, %v1897_v29  ;;  %v1783_v5 = vadd.s32 3, %v1779_v12  ;;  %v2068_v59 = vsub.s32 0, %v4877_v10 }
 0x21a   : > { %v1775_v40 = vsel %vm1692_vm9, %v1774_v30, %v1773_v7  ;;  %v4893_v45 = vmul.u32.u64.low %v1946_v20, %v1941_v27  ;;  %v4894_v35 = vmul.u32.u64.high %v1946_v20, %v1941_v27, %v4893_v45  ;;  %v2210_v54 = vand.u32 2147483647, %v5304_v14 }
 0x21b   : > { %vm2245_vm4 = vcmp.lt.s32.totalorder %v4608_v43, 4  ;;  %2446 = vst [vmem:[%s4734_s7 + $0x18] sm:$0xff] %v2438_v13  ;;  %v1778_v32 = vsel %vm4803_vm6, %v4138_v22, %v1775_v40  ;;  %v2601_v25 = vmin.u32 %v2068_v59, %v4877_v10  ;;  %v1937_v50 = vsel %vm1931_vm0, %v1934_v31, %v1936_v47 }
 0x21c   : > { %v2251_v12 = vsel %vm2245_vm4, %v4793_v19, 920167782  ;;  %3032 = vcosq.f32 %v1778_v32  ;;  %v4909_v2 = vadd.s32 %v4893_v45, %v4873_v11  ;;  %vm1955_vm2 = vc.u32 %v4873_v11, %v4893_v45 }
 0x21d   : > { %v5307_v26 = vor.u32 %v5305_v6, %v5306_v37  ;;  %3034 = vsinq.f32 %v1778_v32  ;;  %v1784_v63 = vand.u32 3, %v1783_v5  ;;  %v2070_v23 = vclz %v2601_v25 }
 0x21e   : > { %v2088_v51 = vsub.s32 4, %v4857_v36  ;;  %v1953_v56 = vmul.u32 %v1946_v20, %v1937_v50  ;;  %v1956_v61 = vadd.s32 1, %v4894_v35  ;;  %v2217_v3 = vand.u32 8388607, %v2210_v54 }
 0x21f   : > { %v2255_v8 = vsel %vm2245_vm4, %v5307_v26, 1326507024  ;;  %vm4923_vm3 = vcmp.le.f32.partialorder %v2002_v52, 0.7853982  ;;  %v2602_v58 = vadd.s32 4294967294, %v2070_v23  ;;  %v2227_v48 = vshll.u32 %v5272_v57, %v4409_v9 }
 0x220   : > { %v2228_v1 = vshrl.u32 %v5271_v49, %v4425_v41  ;;  %v2230_v20 = vshll.u32 %v5271_v49, %v4409_v9  ;;  %v1957_v15 = vsel %vm1955_vm2, %v1956_v61, %v4894_v35  ;;  %v2231_v34 = vshrl.u32 %v5277_v62, %v4425_v41 }
 0x221   : > { %v2233_v52 = vshll.u32 %v5277_v62, %v4409_v9  ;;  %v2234_v39 = vshrl.u32 %v5273_v38, %v4425_v41  ;;  %vm1786_vm7 = vcmp.eq.s32.totalorder %v1784_v63, 0  ;;  %vm2004_vm8 = vcmp.lt.s32.totalorder %v4196_v16, 0 }
 0x222   : > { %vm2603_vm6 = vcmp.lt.s32.totalorder %v2602_v58, 0  ;;  %v1958_v17 = vadd.s32 %v1957_v15, %v1953_v56  ;;  %vm1785_vm9 = vcmp.lt.s32.totalorder %v1784_v63, 2  ;;  %v2229_v7 = vor.u32 %v2228_v1, %v2227_v48 }
 0x223   : > { %v2073_v21 = vsel %vm2603_vm6, 0, %v2602_v58  ;;  %v2232_v0 = vor.u32 %v2231_v34, %v2230_v20  ;;  %v2235_v11 = vor.u32 %v2234_v39, %v2233_v52  ;;  %vm1782_vm5 = vweird.f32 %v4138_v22  ;;  %v5310_v52 = vld [vmem:[#allocation13_spill] sm:$0xff]  ;;  %v5311_v22 = vld [vmem:[#allocation23_spill] sm:$0xff] }
 0x224   : > { %vm1789_vm10 = vcmp.eq.s32.totalorder %v1784_v63, 2  ;;  %v2074_v44 = vsub.s32 32, %v2073_v21  ;;  %v2078_v27 = vsub.s32 4294967266, %v2073_v21  ;;  %v1959_v29 = vadd.s32 536870912, %v1958_v17 }
 0x225   : > { %v2075_v9 = vshll.u32 %v4877_v10, %v2073_v21  ;;  %v2089_v30 = vsel %vm2004_vm8, %v2088_v51, %v4857_v36  ;;  %v2218_v31 = vor.u32 8388608, %v2217_v3  ;;  %vm2242_vm11 = vcmp.lt.s32.totalorder %v4608_v43, 1 }
 0x226   : > { %v2076_v47 = vshrl.u32 %v4822_v33, %v2074_v44  ;;  %v2079_v28 = vadd.s32 127, %v2078_v27  ;;  %v4948_v13 = vshrl.u32 %v1959_v29, 30  ;;  %vm2244_vm12 = vcmp.lt.s32.totalorder %v4608_v43, 3  ;;  %v3033_v5 = vpop.eup %3032 }
 0x227   : > { %v2250_v59 = vsel %vm2242_vm11, %v2229_v7, %v2232_v0  ;;  %v2252_v10 = vsel %vm2244_vm12, %v2235_v11, %v2251_v12  ;;  %v2254_v36 = vsel %vm2242_vm11, %v2232_v0, %v2235_v11  ;;  %v2256_v40 = vsel %vm2244_vm12, %v4793_v19, %v2255_v8  ;;  %v3035_v33 = vpop.eup %3034 }
 0x228   : > { %v1790_v45 = vxor.u32 2147483648, %v3033_v5  ;;  %v2077_v35 = vor.u32 %v2076_v47, %v2075_v9  ;;  %v2080_v32 = vshll.u32 %v2079_v28, 23  ;;  %v1961_v25 = vshll.u32 %v4948_v13, 30  ;;  %v5312_v9 = vld [vmem:[#allocation14_spill] sm:$0xff]  ;;  %v5313_v28 = vld [vmem:[#allocation17_spill] sm:$0xff] }
 0x229   : > { %v1787_v50 = vxor.u32 2147483648, %v3035_v33  ;;  %v2091_v6 = vsel %vm4923_vm3, 0, %v2089_v30  ;;  %v2226_v12 = vshrl.u32 %v5272_v57, %v4425_v41  ;;  %vm2243_vm14 = vcmp.lt.s32.totalorder %v4608_v43, 2 }
 0x22a   : > { %v1791_v37 = vsel %vm1789_vm10, %v1790_v45, %v3035_v33  ;;  %v2081_v26 = vor.u32 4788187, %v2080_v32  ;;  %v4967_v23 = vsub.s32 %v1958_v17, %v1961_v25  ;;  %v2257_v19 = vsel %vm2243_vm14, %v2254_v36, %v2256_v40 }
 0x22b   : > { %v1788_v8 = vsel %vm1786_vm7, %v3033_v5, %v1787_v50  ;;  %v2247_v51 = vsel %vm2245_vm4, %v2235_v11, 2102212464  ;;  %v2253_v56 = vsel %vm2243_vm14, %v2250_v59, %v2252_v10  ;;  %v2258_v41 = vshll.u32 %v2218_v31, 8  ;;  %v5314_v5 = vld [vmem:[#allocation18_spill] sm:$0xff] }
 0x22c   : > { %v1792_v61 = vsel %vm1785_vm9, %v1788_v8, %v1791_v37  ;;  %v2082_v3 = vand.u32 2147483647, %v2081_v26  ;;  %v2084_v58 = vcvt.s32.f32 %v2077_v35  ;;  %v1964_v48 = vsub.s32 0, %v4967_v23 }
 0x22d   : > { %v1793_v1 = vsel %vm1782_vm5, nan, %v1792_v61  ;;  %v2246_v20 = vsel %vm2242_vm11, %v2226_v12, %v2229_v7  ;;  %v4982_v15 = vmul.u32.u64.low %v2258_v41, %v2257_v19  ;;  %v4983_v34 = vmul.u32.u64.high %v2258_v41, %v2257_v19, %v4982_v15 }
 0x22e   : > { %v2437_v39 = vadd.f32 %v5310_v52, %v1793_v1  ;;  %v2085_v17 = vmul.f32 %v2084_v58, %v2082_v3  ;;  %v2597_v21 = vmin.u32 %v1964_v48, %v4967_v23  ;;  %v2248_v63 = vsel %vm2244_vm12, %v2232_v0, %v2247_v51 }
 0x22f   : > { %v2095_v11 = vadd.s32 3, %v2091_v6  ;;  %v4989_v44 = vmul.u32.u64.low %v2258_v41, %v2253_v56  ;;  %v4990_v27 = vmul.u32.u64.high %v2258_v41, %v2253_v56, %v4989_v44  ;;  %vm2141_vm13 = vcmp.lt.s32.totalorder %v5311_v22, 4 }
 0x230   : > { %2445 = vst [vmem:[%s4734_s7 + $0x10] sm:$0xff] %v2437_v39  ;;  %v2086_v29 = vxor.u32 2147483648, %v2085_v17  ;;  %v1966_v7 = vclz %v2597_v21  ;;  %v2106_v30 = vand.u32 2147483647, %v5312_v9  ;;  %v2147_v31 = vsel %vm2141_vm13, %v4887_v18, 920167782 }
 0x231   : > { %v2249_v47 = vsel %vm2243_vm14, %v2246_v20, %v2248_v63  ;;  %v5001_v0 = vadd.s32 %v4989_v44, %v4983_v34  ;;  %v5315_v59 = vor.u32 %v5313_v28, %v5314_v5  ;;  %vm2267_vm15 = vc.u32 %v4983_v34, %v4989_v44 }
 0x232   : > { %v2087_v36 = vsel %vm2004_vm8, %v2086_v29, %v2085_v17  ;;  %v2598_v40 = vadd.s32 4294967294, %v1966_v7  ;;  %v5014_v33 = vand.u32 3, %v2095_v11  ;;  %v1984_v45 = vsub.s32 4, %v4948_v13 }
 0x233   : > { %v2151_v10 = vsel %vm2141_vm13, %v5315_v59, 1326507024  ;;  %v2090_v43 = vsel %vm4923_vm3, %v4196_v16, %v2087_v36  ;;  %v2268_v35 = vadd.s32 1, %v4990_v27  ;;  %v2265_v32 = vmul.u32 %v2258_v41, %v2249_v47 }
 0x234   : > { %3036 = vcosq.f32 %v2090_v43  ;;  %vm2599_vm0 = vcmp.lt.s32.totalorder %v2598_v40, 0  ;;  %v2113_v25 = vand.u32 8388607, %v2106_v30  ;;  %v2124_v55 = vshrl.u32 %v5271_v49, %v4378_v60 }
 0x235   : > { %3038 = vsinq.f32 %v2090_v43  ;;  %v1969_v50 = vsel %vm2599_vm0, 0, %v2598_v40  ;;  %v2269_v6 = vsel %vm2267_vm15, %v2268_v35, %v4990_v27  ;;  %v2123_v19 = vshll.u32 %v5272_v57, %v4356_v24 }
 0x236   : > { %v1970_v12 = vsub.s32 32, %v1969_v50  ;;  %v1974_v37 = vsub.s32 4294967266, %v1969_v50  ;;  %v2270_v26 = vadd.s32 %v2269_v6, %v2265_v32  ;;  %v2126_v8 = vshll.u32 %v5271_v49, %v4356_v24 }
 0x237   : > { %v2127_v51 = vshrl.u32 %v5277_v62, %v4378_v60  ;;  %v2129_v56 = vshll.u32 %v5277_v62, %v4356_v24  ;;  %v2130_v41 = vshrl.u32 %v5273_v38, %v4378_v60  ;;  %v1971_v61 = vshll.u32 %v4967_v23, %v1969_v50 }
 0x238   : > { %v1972_v3 = vshrl.u32 %v4909_v2, %v1970_v12  ;;  %v1975_v58 = vadd.s32 127, %v1974_v37  ;;  %v2271_v48 = vadd.s32 536870912, %v2270_v26  ;;  %vm1900_vm1 = vcmp.lt.s32.totalorder %v5299_v42, 0 }
 0x239   : > { %v2125_v1 = vor.u32 %v2124_v55, %v2123_v19  ;;  %v2128_v20 = vor.u32 %v2127_v51, %v2126_v8  ;;  %v2131_v49 = vor.u32 %v2130_v41, %v2129_v56  ;;  %vm2097_vm4 = vcmp.lt.s32.totalorder %v5014_v33, 2  ;;  %v5318_v19 = vld [vmem:[#allocation21_spill] sm:$0xff] }
 0x23a   : > { %vm2098_vm2 = vcmp.eq.s32.totalorder %v5014_v33, 0  ;;  %v1973_v15 = vor.u32 %v1972_v3, %v1971_v61  ;;  %v1976_v24 = vshll.u32 %v1975_v58, 23  ;;  %v5038_v62 = vshrl.u32 %v2271_v48, 30 }
 0x23b   : > { %vm2101_vm3 = vcmp.eq.s32.totalorder %v5014_v33, 2  ;;  %v1985_v38 = vsel %vm1900_vm1, %v1984_v45, %v4948_v13  ;;  %v2114_v2 = vor.u32 8388608, %v2113_v25  ;;  %vm2138_vm7 = vcmp.lt.s32.totalorder %v5311_v22, 1 }
 0x23c   : > { %v1977_v23 = vor.u32 4788187, %v1976_v24  ;;  %v2273_v34 = vshll.u32 %v5038_v62, 30  ;;  %vm2140_vm8 = vcmp.lt.s32.totalorder %v5311_v22, 3  ;;  %v2150_v52 = vsel %vm2138_vm7, %v2128_v20, %v2131_v49 }
 0x23d   : > { %v2122_v39 = vshrl.u32 %v5272_v57, %v4378_v60  ;;  %v2146_v17 = vsel %vm2138_vm7, %v2125_v1, %v2128_v20  ;;  %v2148_v13 = vsel %vm2140_vm8, %v2131_v49, %v2147_v31  ;;  %v2152_v21 = vsel %vm2140_vm8, %v4887_v18, %v2151_v10 }
 0x23e   : > { %v3037_v63 = vpop.eup %3036  ;;  %v1978_v11 = vand.u32 2147483647, %v1977_v23  ;;  %v1980_v44 = vcvt.s32.f32 %v1973_v15  ;;  %v2274_v27 = vsub.s32 %v2270_v26, %v2273_v34  ;;  %vm2139_vm6 = vcmp.lt.s32.totalorder %v5311_v22, 2 }
 0x23f   : > { %v3039_v29 = vpop.eup %3038  ;;  %v2102_v7 = vxor.u32 2147483648, %v3037_v63  ;;  %v2143_v60 = vsel %vm2141_vm13, %v2131_v49, 2102212464  ;;  %v2153_v57 = vsel %vm2139_vm6, %v2150_v52, %v2152_v21  ;;  %v2154_v47 = vshll.u32 %v2114_v2, 8 }
 0x240   : > { %v2099_v31 = vxor.u32 2147483648, %v3039_v29  ;;  %v1981_v28 = vmul.f32 %v1980_v44, %v1978_v11  ;;  %v2276_v5 = vsub.s32 0, %v2274_v27  ;;  %v2149_v18 = vsel %vm2139_vm6, %v2146_v17, %v2148_v13 }
 0x241   : > { %v2103_v59 = vsel %vm2101_vm3, %v2102_v7, %v3039_v29  ;;  %v2142_v10 = vsel %vm2138_vm7, %v2122_v39, %v2125_v1  ;;  %v5069_v36 = vmul.u32.u64.low %v2154_v47, %v2153_v57  ;;  %v5070_v40 = vmul.u32.u64.high %v2154_v47, %v2153_v57, %v5069_v36 }
 0x242   : > { %v2100_v43 = vsel %vm2098_vm2, %v3037_v63, %v2099_v31  ;;  %v1982_v45 = vxor.u32 2147483648, %v1981_v28  ;;  %v2609_v35 = vmin.u32 %v2276_v5, %v2274_v27  ;;  %v2144_v32 = vsel %vm2140_vm8, %v2128_v20, %v2143_v60 }
 0x243   : > { %vm2094_vm9 = vweird.f32 %v4196_v16  ;;  %v2104_v25 = vsel %vm2097_vm4, %v2100_v43, %v2103_v59  ;;  %v5079_v50 = vmul.u32.u64.low %v2154_v47, %v2149_v18  ;;  %v5080_v6 = vmul.u32.u64.high %v2154_v47, %v2149_v18, %v5079_v50  ;;  %v5319_v59 = vld [vmem:[#allocation24_spill] sm:$0xff] }
 0x244   : > { %v2105_v55 = vsel %vm2094_vm9, nan, %v2104_v25  ;;  %vm5084_vm5 = vcmp.le.f32.partialorder %v1898_v4, 0.7853982  ;;  %v1983_v37 = vsel %vm1900_vm1, %v1982_v45, %v1981_v28  ;;  %v2278_v26 = vclz %v2609_v35 }
 0x245   : > { %v2440_v8 = vadd.f32 %v5318_v19, %v2105_v55  ;;  %v1986_v16 = vsel %vm5084_vm5, %v5299_v42, %v1983_v37  ;;  %v1987_v33 = vsel %vm5084_vm5, 0, %v1985_v38  ;;  %v2145_v51 = vsel %vm2139_vm6, %v2142_v10, %v2144_v32 }
 0x246   : > { %3040 = vcosq.f32 %v1986_v16  ;;  %v2610_v4 = vadd.s32 4294967294, %v2278_v26  ;;  %v2162_v56 = vadd.s32 %v5079_v50, %v5070_v40  ;;  %vm2163_vm10 = vc.u32 %v5070_v40, %v5079_v50 }
 0x247   : > { %2448 = vst [vmem:[%s4734_s7 + $0x28] sm:$0xff] %v2440_v8  ;;  %3042 = vsinq.f32 %v1986_v16  ;;  %v2164_v41 = vadd.s32 1, %v5080_v6  ;;  %v2161_v61 = vmul.u32 %v2154_v47, %v2145_v51  ;;  %v1991_v3 = vadd.s32 3, %v1987_v33 }
 0x248   : > { %vm2611_vm11 = vcmp.lt.s32.totalorder %v2610_v4, 0  ;;  %v2296_v57 = vsub.s32 4, %v5038_v62  ;;  %vm1990_vm15 = vweird.f32 %v5299_v42  ;;  %vm2212_vm0 = vcmp.lt.s32.totalorder %v5304_v14, 0 }
 0x249   : > { %v2281_v58 = vsel %vm2611_vm11, 0, %v2610_v4  ;;  %v2165_v48 = vsel %vm2163_vm10, %v2164_v41, %v5080_v6  ;;  %v1992_v2 = vand.u32 3, %v1991_v3  ;;  %vm2211_vm1 = vcmp.le.f32.partialorder %v2210_v54, 0.7853982 }
 0x24a   : > { %v2282_v1 = vsub.s32 32, %v2281_v58  ;;  %v2286_v20 = vsub.s32 4294967266, %v2281_v58  ;;  %v2166_v22 = vadd.s32 %v2165_v48, %v2161_v61  ;;  %v2283_v49 = vshll.u32 %v2274_v27, %v2281_v58 }
 0x24b   : > { %vm1997_vm12 = vcmp.eq.s32.totalorder %v1992_v2, 2  ;;  %vm1993_vm14 = vcmp.lt.s32.totalorder %v1992_v2, 2  ;;  %vm1994_vm13 = vcmp.eq.s32.totalorder %v1992_v2, 0  ;;  %v2297_v40 = vsel %vm2212_vm0, %v2296_v57, %v5038_v62 }
 0x24c   : > { %v2284_v15 = vshrl.u32 %v5001_v0, %v2282_v1  ;;  %v2287_v24 = vadd.s32 127, %v2286_v20  ;;  %v2167_v38 = vadd.s32 536870912, %v2166_v22  ;;  %v2299_v35 = vsel %vm2211_vm1, 0, %v2297_v40 }
 0x24d   : > { %v2303_v25 = vadd.s32 3, %v2299_v35  ;;  %vm2302_vm8 = vweird.f32 %v5304_v14  ;;  %vm2108_vm6 = vcmp.lt.s32.totalorder %v5312_v9, 0  ;;  %vm2107_vm9 = vcmp.le.f32.partialorder %v2106_v30, 0.7853982 }
 0x24e   : > { %v2285_v23 = vor.u32 %v2284_v15, %v2283_v49  ;;  %v2288_v34 = vshll.u32 %v2287_v24, 23  ;;  %v5104_v52 = vshrl.u32 %v2167_v38, 30 }
 0x24f   : > { %v2304_v54 = vand.u32 3, %v2303_v25 }
 0x250   : > { %v3041_v39 = vpop.eup %3040  ;;  %v2289_v17 = vor.u32 4788187, %v2288_v34  ;;  %v2169_v13 = vshll.u32 %v5104_v52, 30  ;;  %v2292_v29 = vcvt.s32.f32 %v2285_v23 }
 0x251   : > { %v3043_v21 = vpop.eup %3042  ;;  %v1998_v63 = vxor.u32 2147483648, %v3041_v39  ;;  %vm2309_vm2 = vcmp.eq.s32.totalorder %v2304_v54, 2  ;;  %vm2306_vm3 = vcmp.eq.s32.totalorder %v2304_v54, 0  ;;  %vm2305_vm7 = vcmp.lt.s32.totalorder %v2304_v54, 2 }
 0x252   : > { %v1995_v11 = vxor.u32 2147483648, %v3043_v21  ;;  %v2290_v44 = vand.u32 2147483647, %v2289_v17  ;;  %v2170_v27 = vsub.s32 %v2166_v22, %v2169_v13 }
 0x253   : > { %v1999_v0 = vsel %vm1997_vm12, %v1998_v63, %v3043_v21  ;;  %vm2198_vm12 = vweird.f32 %v5312_v9 }
 0x254   : > { %v1996_v7 = vsel %vm1994_vm13, %v3041_v39, %v1995_v11  ;;  %v2293_v60 = vmul.f32 %v2292_v29, %v2290_v44  ;;  %v2172_v47 = vsub.s32 0, %v2170_v27 }
 0x255   : > { %v2000_v31 = vsel %vm1993_vm14, %v1996_v7, %v1999_v0 }
 0x256   : > { %v2001_v28 = vsel %vm1990_vm15, nan, %v2000_v31  ;;  %v2294_v5 = vxor.u32 2147483648, %v2293_v60  ;;  %v2605_v18 = vmin.u32 %v2172_v47, %v2170_v27 }
 0x257   : > { %v2439_v10 = vadd.f32 %v5319_v59, %v2001_v28 }
 0x258   : > { %v2295_v36 = vsel %vm2212_vm0, %v2294_v5, %v2293_v60  ;;  %v2174_v43 = vclz %v2605_v18 }
 0x259   : > { %2447 = vst [vmem:[%s4734_s7 + $0x20] sm:$0xff] %v2439_v10  ;;  %v2298_v45 = vsel %vm2211_vm1, %v5304_v14, %v2295_v36 }
 0x25a   : > { %3044 = vcosq.f32 %v2298_v45  ;;  %v2606_v42 = vadd.s32 4294967294, %v2174_v43 }
 0x25b   : > { %3046 = vsinq.f32 %v2298_v45 }
 0x25c   : > { %vm2607_vm4 = vcmp.lt.s32.totalorder %v2606_v42, 0 }
 0x25d   : > { %v2177_v32 = vsel %vm2607_vm4, 0, %v2606_v42 }
 0x25e   : > { %v2178_v50 = vsub.s32 32, %v2177_v32  ;;  %v2182_v6 = vsub.s32 4294967266, %v2177_v32  ;;  %v2179_v55 = vshll.u32 %v2170_v27, %v2177_v32 }
 0x260   : > { %v2180_v12 = vshrl.u32 %v2162_v56, %v2178_v50  ;;  %v2183_v37 = vadd.s32 127, %v2182_v6  ;;  %v2192_v56 = vsub.s32 4, %v5104_v52 }
 0x262   : > { %v2181_v26 = vor.u32 %v2180_v12, %v2179_v55  ;;  %v2184_v19 = vshll.u32 %v2183_v37, 23  ;;  %v2193_v15 = vsel %vm2108_vm6, %v2192_v56, %v5104_v52 }
 0x263   : > { %v2195_v14 = vsel %vm2107_vm9, 0, %v2193_v15 }
 0x264   : > { %v3045_v62 = vpop.eup %3044  ;;  %v2185_v8 = vor.u32 4788187, %v2184_v19  ;;  %v2188_v41 = vcvt.s32.f32 %v2181_v26  ;;  %v2199_v38 = vadd.s32 3, %v2195_v14 }
 0x265   : > { %v3047_v16 = vpop.eup %3046  ;;  %v2310_v33 = vxor.u32 2147483648, %v3045_v62 }
 0x266   : > { %v2307_v51 = vxor.u32 2147483648, %v3047_v16  ;;  %v2186_v4 = vand.u32 2147483647, %v2185_v8  ;;  %v2200_v2 = vand.u32 3, %v2199_v38 }
 0x267   : > { %v2311_v61 = vsel %vm2309_vm2, %v2310_v33, %v3047_v16 }
 0x268   : > { %v2308_v3 = vsel %vm2306_vm3, %v3045_v62, %v2307_v51  ;;  %v2189_v58 = vmul.f32 %v2188_v41, %v2186_v4  ;;  %vm2205_vm5 = vcmp.eq.s32.totalorder %v2200_v2, 2  ;;  %vm2202_vm10 = vcmp.eq.s32.totalorder %v2200_v2, 0 }
 0x269   : > { %v2312_v48 = vsel %vm2305_vm7, %v2308_v3, %v2311_v61  ;;  %vm2201_vm11 = vcmp.lt.s32.totalorder %v2200_v2, 2 }
 0x26a   : > { %v2313_v1 = vsel %vm2302_vm8, nan, %v2312_v48  ;;  %v2190_v20 = vxor.u32 2147483648, %v2189_v58 }
 0x26b   : > { %v2442_v22 = vadd.f32 %v4665_v53, %v2313_v1 }
 0x26c   : > { %v2191_v49 = vsel %vm2108_vm6, %v2190_v20, %v2189_v58 }
 0x26d   : > { %2450 = vst [vmem:[%s4734_s7 + $0x38] sm:$0xff] %v2442_v22  ;;  %v2194_v24 = vsel %vm2107_vm9, %v5312_v9, %v2191_v49 }
 0x26e   : > { %3048 = vcosq.f32 %v2194_v24 }
 0x26f   : > { %3050 = vsinq.f32 %v2194_v24 }
 0x278   : > { %v3049_v23 = vpop.eup %3048 }
 0x279   : > { %v3051_v53 = vpop.eup %3050  ;;  %v2206_v34 = vxor.u32 2147483648, %v3049_v23 }
 0x27a   : > { %v2203_v39 = vxor.u32 2147483648, %v3051_v53 }
 0x27b   : > { %v2207_v30 = vsel %vm2205_vm5, %v2206_v34, %v3051_v53 }
 0x27c   : > { %v2204_v52 = vsel %vm2202_vm10, %v3049_v23, %v2203_v39 }
 0x27d   : > { %v2208_v17 = vsel %vm2201_vm11, %v2204_v52, %v2207_v30 }
 0x27e   : > { %v2209_v13 = vsel %vm2198_vm12, nan, %v2208_v17 }
 0x27f   : > { %v2441_v21 = vadd.f32 %v4759_v46, %v2209_v13 }
 0x281   : > { %2449 = vst [vmem:[%s4734_s7 + $0x30] sm:$0xff] %v2441_v21 }
 0x282   : > { %3093 = shalt.err (!%p3090_p7)
}
 0x283   : > { %s3094_s23 = scalar_lea.hbm %s5134_s12, 1024  ;;  %s3098_s29 = scalar_lea.hbm %s5184_s4, 4096 }
 0x284   : > { %p3095_p8 = scmp.ne.s32.totalorder %s5134_s12, %s3094_s23  ;;  %p3099_p1 = scmp.lt.u32.totalorder %s5134_s12, %s5184_s4 }
 0x285   : > { %p3100_p0 = scmp.lt.u32.totalorder %s3098_s29, %s3094_s23  ;;  %p3102_p6 = scmp.lt.u32.totalorder %s3094_s23, %s5134_s12 }
 0x286   : > { %p3096_p11 = pnand %p3095_p8, %p5320_p9 }
 0x287   : > { %p3101_p5 = por %p3100_p0, %p3099_p1 }
 0x288   : > { %p3097_p13 = pneg %p3096_p11 }
 0x289   : > { %p3103_p10 = por %p3102_p6, %p3101_p5 }
 0x28b   : > { %p3104_p12 = pnand %p3103_p10, %p3097_p13 }
 0x28d   : > { %3107 = shalt.err (!%p3104_p12)
}
 0x28e   : > { %s3159_s6 = smov 128   ;;  %s3160_s7 = smov 8  }
 0x28f   : > { %2963 = dma.vmem_to_hbm [thread:$0]  (%p5320_p9), %s5128_s8, 1024, %s5134_s12, %s5139_s13, %s3159_s6, %s3159_s6, %s3160_s7  }
 0x290 PF: > { %p2975_p2 = scmp.ge.s32.totalorder %s3146_s18, 2  ;;  %s2480_s9 = sand.u32 1, %s3134_s15  }
 0x291   : > { %p5321_p3 = scmp.ne.s32.totalorder %s5221_s26, 0  ;;  %s2481_s10 = scalar_lea.sflag [#allocation4], %s2480_s9 }
 0x293   : > { %p2970_p4 = pnand %p2975_p2, %p5321_p3 }
 0x295   : > { %3129 = dma.done.wait (!%p2970_p4), %s2481_s10, 1024  }
 0x296   : > { %3131 = vsyncadd (!%p2970_p4), %s2481_s10, 4294966272  ;;  %p15_p7 = scmp.ge.s32.totalorder %s3211_s21, 6   ;;  %s5322_s15 = smov %s3138_s16 }
 0x297   : > { %s5323_s16 = smov %s3142_s17  ;;  %s5324_s17 = smov %s3222_s24 }
 0x298   : > { %s5325_s18 = smov %s3211_s21  ;;  %17 = sbr.rel (!%p15_p7) target bundleno = 4 (0x4), region = 76 }
 0x29f   :  { %2486 = vsyncpa [#allocation3], 1 }
 0x2a0   :  { %2488 = vsyncpa [#allocation3 + $0x1], 1 }
 0x2a1   :  { %2489 = vsyncpa [#allocation4], 1 }
 0x2a2   :  { %2491 = vsyncpa [#allocation4 + $0x1], 1 }

</bundles_post_ra>
